<compile_context>
chip_gen: v7x
topology: tpu7x:2x2x1
jax: 0.10.0
libtpu: 0.0.40
codegen_flags: <defaults>
</compile_context>

<pallas_src>
from functools import partial

import jax
import jax.numpy as jnp
from jax.experimental import pallas as pl
from jax.experimental.pallas import tpu as pltpu

# --- small synthetic config (real RadDINO would be 518px/14/768/12/12) ---
IMG = 16          # image spatial size
PATCH = 4         # patch size
C_IN = 3          # input channels (chest X-ray replicated to 3 ch)
HIDDEN = 32       # hidden size == feature_dim
HEADS = 2         # attention heads
LAYERS = 2        # encoder layers
MLP = 64          # MLP intermediate size
EPS = 1e-6        # DINOv2 LayerNorm eps


# ----------------------------- fused Pallas kernel ---------------------------

def _raddino_block_kernel(
    patches_ref, patch_w_ref, base_ref,
    ln1g_ref, ln1b_ref, wqkv_ref, bqkv_ref, wo_ref, bo_ref, ls1_ref,
    ln2g_ref, ln2b_ref, w1_ref, b1_ref, w2_ref, b2_ref, ls2_ref,
    lng_ref, lnb_ref,
    o_ref, x_scr,
    *, heads, seq_len):
    """One grid step = (one batch element, one encoder layer)."""
    l = pl.program_id(1)
    n_layers = pl.num_programs(1)
    S_pad, D = x_scr.shape
    dh = D // heads

    def layernorm(v, g, b):
        mu = jnp.mean(v, axis=-1, keepdims=True)
        var = jnp.mean((v - mu) ** 2, axis=-1, keepdims=True)
        return (v - mu) * jax.lax.rsqrt(var + EPS) * g + b

    # ---- patch embedding + cls/pos/bias add (first layer step only) ----
    @pl.when(l == 0)
    def _():
        tok = jnp.dot(patches_ref[0], patch_w_ref[...],
                      preferred_element_type=jnp.float32)          # [S_pad, D]
        # `base` carries cls token, positional embeddings and patch bias laid
        # out per sequence row (parameter-only, precomputed in the wrapper).
        x_scr[...] = tok + base_ref[0]

    x = x_scr[...]                                                 # [S_pad, D] f32

    # Key-padding mask bias (hoisted, constant within the step).
    k_ids = jax.lax.broadcasted_iota(jnp.int32, (1, S_pad), 1)
    neg_bias = jnp.where(k_ids < seq_len, 0.0, -1e30).astype(jnp.float32)

    # ---- multi-head self-attention (pre-LN, fused QKV, LayerScale residual) ----
    y = layernorm(x, ln1g_ref[0], ln1b_ref[0])                     # [S_pad, D] f32
    qkv = jnp.dot(y.astype(jnp.bfloat16), wqkv_ref[0],
                  preferred_element_type=jnp.float32) + bqkv_ref[0]  # [S_pad, 3D]

    head_outs = []
    for h in range(heads):                 # static loop; only score/PV matmuls
        qh = qkv[:, h * dh:(h + 1) * dh]                           # 1/sqrt(dh) pre-folded
        kh = qkv[:, D + h * dh:D + (h + 1) * dh]
        vh = qkv[:, 2 * D + h * dh:2 * D + (h + 1) * dh]
        s = jnp.dot(qh.astype(jnp.bfloat16), kh.T.astype(jnp.bfloat16),
                    preferred_element_type=jnp.float32) + neg_bias  # [S_pad, S_pad]
        s = s - jnp.max(s, axis=-1, keepdims=True)
        p = jnp.exp(s)
        p = p * pl.reciprocal(jnp.sum(p, axis=-1, keepdims=True), approx=True)
        head_outs.append(jnp.dot(p.astype(jnp.bfloat16), vh.astype(jnp.bfloat16),
                                 preferred_element_type=jnp.float32))
    attn = jnp.concatenate(head_outs, axis=-1)                     # [S_pad, D]
    attn = jnp.dot(attn.astype(jnp.bfloat16), wo_ref[0],
                   preferred_element_type=jnp.float32) + bo_ref[0]
    h1 = x + ls1_ref[0] * attn                 # residual + LayerScale

    # ---- MLP ----
    y2 = layernorm(h1, ln2g_ref[0], ln2b_ref[0])
    m = jnp.dot(y2.astype(jnp.bfloat16), w1_ref[0],
                preferred_element_type=jnp.float32) + b1_ref[0]
    # TODO(synk): HF Dinov2 uses exact (erf) GELU; tanh approximation kept here
    # for guaranteed Mosaic lowering.
    m = jax.nn.gelu(m, approximate=True)
    m = jnp.dot(m.astype(jnp.bfloat16), w2_ref[0],
                preferred_element_type=jnp.float32) + b2_ref[0]
    x_new = h1 + ls2_ref[0] * m
    x_scr[...] = x_new                         # persist across layer steps

    # ---- final LayerNorm on the CLS row (last layer step only) ----
    @pl.when(l == n_layers - 1)
    def _():
        cls = x_new[0:1, :]                                        # [1, D]
        o_ref[0] = layernorm(cls, lng_ref[...], lnb_ref[...])


# ------------------------------ wrappers --------------------------------------

def extract_patches(x):
    # x: [B, C, H, W] (NCHW) -> [B, num_patches, C*p*p]
    # Flattening order (C, kh, kw) matches PyTorch Conv2d weight flattening.
    B, C, H, W = x.shape
    ph, pw = H // PATCH, W // PATCH
    x = x.reshape(B, C, ph, PATCH, pw, PATCH)
    x = x.transpose(0, 2, 4, 1, 3, 5)             # [B, ph, pw, C, p, p]
    return x.reshape(B, ph * pw, C * PATCH * PATCH)


def _prepare_fused_inputs(params, patches):
    """Parameter-only preprocessing: pad / stack / fuse QKV / fold scale / bf16."""
    D, H = HIDDEN, HEADS
    dh = D // H
    B, P, K = patches.shape
    S = 1 + P
    S_pad = ((S + 15) // 16) * 16                 # bf16 sublane-aligned sequence
    scale = 1.0 / (dh ** 0.5)

    # Row 0 reserved for CLS, trailing rows are padding (stay zero).
    patches_pad = jnp.pad(
        patches, ((0, 0), (1, S_pad - S), (0, 0))).astype(jnp.bfloat16)

    # base[0]   = cls + pos[0]
    # base[1:S] = patch_bias + pos[1:S]
    # base[S:]  = 0
    cls = params["cls"].reshape(1, D)
    pos = params["pos"].reshape(S, D)
    pb = params["patch_b"].reshape(1, D)
    base = jnp.concatenate(
        [cls + pos[:1], pb + pos[1:], jnp.zeros((S_pad - S, D), jnp.float32)],
        axis=0)[None]                             # [1, S_pad, D]

    # Fold 1/sqrt(dh) into the Q columns of the fused QKV weight / bias.
    qkv_scale = jnp.concatenate(
        [jnp.full((1, D), scale, jnp.float32), jnp.ones((1, 2 * D), jnp.float32)],
        axis=1)                                   # [1, 3D]

    def stack(fn, dtype=jnp.float32):
        return jnp.stack([fn(lp) for lp in params["layers"]], axis=0).astype(dtype)

    weights = [
        stack(lambda lp: lp["ln1_g"]),                               # ln1g [L,1,D]
        stack(lambda lp: lp["ln1_b"]),                               # ln1b
        stack(lambda lp: lp["w_qkv"] * qkv_scale, jnp.bfloat16),     # wqkv [L,D,3D]
        stack(lambda lp: lp["b_qkv"] * qkv_scale),                   # bqkv [L,1,3D]
        stack(lambda lp: lp["w_o"], jnp.bfloat16),                   # wo   [L,D,D]
        stack(lambda lp: lp["b_o"]),                                 # bo
        stack(lambda lp: lp["ls1"]),                                 # ls1
        stack(lambda lp: lp["ln2_g"]),                               # ln2g
        stack(lambda lp: lp["ln2_b"]),                               # ln2b
        stack(lambda lp: lp["w_1"], jnp.bfloat16),                   # w1   [L,D,M]
        stack(lambda lp: lp["b_1"]),                                 # b1
        stack(lambda lp: lp["w_2"], jnp.bfloat16),                   # w2   [L,M,D]
        stack(lambda lp: lp["b_2"]),                                 # b2
        stack(lambda lp: lp["ls2"]),                                 # ls2
    ]
    inputs = [patches_pad, params["patch_w"].astype(jnp.bfloat16), base,
              *weights, params["ln_g"], params["ln_b"]]
    return inputs, S, S_pad


def raddino_backbone_forward(x, params):
    """Forward pass: NCHW image -> CLS features [B, feature_dim]."""
    B = x.shape[0]
    D, M = HIDDEN, MLP
    K = C_IN * PATCH * PATCH
    patches = extract_patches(x)                  # [B, P, K]
    inputs, seq_len, S_pad = _prepare_fused_inputs(params, patches)

    def layer_spec(*trail):
        # Stacked [LAYERS, ...] weight: stream one layer's block per grid step.
        return pl.BlockSpec((1,) + trail, lambda b, l: (l,) + (0,) * len(trail))

    in_specs = [
        pl.BlockSpec((1, S_pad, K), lambda b, l: (b, 0, 0)),         # patches
        pl.BlockSpec((K, D), lambda b, l: (0, 0)),                   # patch_w
        pl.BlockSpec((1, S_pad, D), lambda b, l: (0, 0, 0)),         # base (shared)
        layer_spec(1, D), layer_spec(1, D),                          # ln1 g/b
        layer_spec(D, 3 * D), layer_spec(1, 3 * D),                  # wqkv / bqkv
        layer_spec(D, D), layer_spec(1, D),                          # wo / bo
        layer_spec(1, D),                                            # ls1
        layer_spec(1, D), layer_spec(1, D),                          # ln2 g/b
        layer_spec(D, M), layer_spec(1, M),                          # w1 / b1
        layer_spec(M, D), layer_spec(1, D),                          # w2 / b2
        layer_spec(1, D),                                            # ls2
        pl.BlockSpec((1, D), lambda b, l: (0, 0)),                   # final ln_g
        pl.BlockSpec((1, D), lambda b, l: (0, 0)),                   # final ln_b
    ]
    out_spec = pl.BlockSpec((1, 1, D), lambda b, l: (b, 0, 0))

    kernel = partial(_raddino_block_kernel, heads=HEADS, seq_len=seq_len)
    out = pl.pallas_call(
        kernel,
        out_shape=jax.ShapeDtypeStruct((B, 1, D), jnp.float32),
        grid_spec=pltpu.PrefetchScalarGridSpec(
            num_scalar_prefetch=0,
            grid=(B, LAYERS),
            in_specs=in_specs,
            out_specs=out_spec,
            scratch_shapes=[pltpu.VMEM((S_pad, D), jnp.float32)],    # persistent x
        ),
        compiler_params=pltpu.CompilerParams(
            dimension_semantics=("parallel", "arbitrary")),
    )(*inputs)
    return out[:, 0, :]


# ------------------------------ parameters ------------------------------------
# TODO(synk): real RadDINO loads pretrained HF Dinov2 weights; here we init
# deterministically in-script instead.

def init_params(key):
    D, M = HIDDEN, MLP
    K = C_IN * PATCH * PATCH
    P = (IMG // PATCH) ** 2
    keys = jax.random.split(key, 3)

    def nrm(k, shape, scale=0.02):
        return scale * jax.random.normal(k, shape, dtype=jnp.float32)

    params = dict(
        patch_w=nrm(keys[0], (K, D)),
        patch_b=jnp.zeros((1, D), jnp.float32),
        cls=nrm(keys[1], (1, 1, D)),
        pos=nrm(keys[2], (1, 1 + P, D)),
        ln_g=jnp.ones((1, D), jnp.float32),
        ln_b=jnp.zeros((1, D), jnp.float32),
        layers=[],
    )
    for i in range(LAYERS):
        lk = jax.random.split(jax.random.fold_in(key, 100 + i), 4)
        params["layers"].append(dict(
            ln1_g=jnp.ones((1, D), jnp.float32),
            ln1_b=jnp.zeros((1, D), jnp.float32),
            w_qkv=nrm(lk[0], (D, 3 * D)),
            b_qkv=jnp.zeros((1, 3 * D), jnp.float32),
            w_o=nrm(lk[1], (D, D)),
            b_o=jnp.zeros((1, D), jnp.float32),
            ls1=jnp.full((1, D), 0.1, jnp.float32),
            ln2_g=jnp.ones((1, D), jnp.float32),
            ln2_b=jnp.zeros((1, D), jnp.float32),
            w_1=nrm(lk[2], (D, M)),
            b_1=jnp.zeros((1, M), jnp.float32),
            w_2=nrm(lk[3], (M, D)),
            b_2=jnp.zeros((1, D), jnp.float32),
            ls2=jnp.full((1, D), 0.1, jnp.float32),
        ))
    return params


if __name__ == "__main__":
    key = jax.random.PRNGKey(0)
    pkey, xkey = jax.random.split(key)
    params = init_params(pkey)

    # NCHW input, like PyTorch
    x = jax.random.normal(xkey, (2, C_IN, IMG, IMG), dtype=jnp.float32)

    fwd = jax.jit(raddino_backbone_forward)
    feats = fwd(x, params)
    jax.block_until_ready(feats)
    assert feats.shape == (2, HIDDEN), feats.shape
    assert feats.dtype == jnp.float32
    print("KERNEL_OK")
</pallas_src>

<mosaic_0001>
module attributes {stable_mosaic.version = 11 : i64} {
  func.func @_raddino_block_kernel(%arg0: i32, %arg1: i32, %arg2: memref<1x32x48xbf16, #tpu.memory_space<vmem>>, %arg3: memref<48x32xbf16, #tpu.memory_space<vmem>>, %arg4: memref<1x32x32xf32, #tpu.memory_space<vmem>>, %arg5: memref<1x1x32xf32, #tpu.memory_space<vmem>>, %arg6: memref<1x1x32xf32, #tpu.memory_space<vmem>>, %arg7: memref<1x32x96xbf16, #tpu.memory_space<vmem>>, %arg8: memref<1x1x96xf32, #tpu.memory_space<vmem>>, %arg9: memref<1x32x32xbf16, #tpu.memory_space<vmem>>, %arg10: memref<1x1x32xf32, #tpu.memory_space<vmem>>, %arg11: memref<1x1x32xf32, #tpu.memory_space<vmem>>, %arg12: memref<1x1x32xf32, #tpu.memory_space<vmem>>, %arg13: memref<1x1x32xf32, #tpu.memory_space<vmem>>, %arg14: memref<1x32x64xbf16, #tpu.memory_space<vmem>>, %arg15: memref<1x1x64xf32, #tpu.memory_space<vmem>>, %arg16: memref<1x64x32xbf16, #tpu.memory_space<vmem>>, %arg17: memref<1x1x32xf32, #tpu.memory_space<vmem>>, %arg18: memref<1x1x32xf32, #tpu.memory_space<vmem>>, %arg19: memref<1x32xf32, #tpu.memory_space<vmem>>, %arg20: memref<1x32xf32, #tpu.memory_space<vmem>>, %arg21: memref<1x1x32xf32, #tpu.memory_space<vmem>>, %arg22: memref<32x32xf32, #tpu.memory_space<vmem>>) attributes {dimension_semantics = [#tpu.dimension_semantics<parallel>, #tpu.dimension_semantics<arbitrary>], iteration_bounds = array<i64: 2, 2>, scalar_prefetch = 0 : i64, scratch_operands = 1 : i64, tpu.core_type = #tpu.core_type<tc>, window_params = [{transform_indices = @transform_0, window_bounds = array<i64: 1, 32, 48>}, {pipeline_mode = #tpu.pipeline_mode<synchronous>, transform_indices = @transform_1, window_bounds = array<i64: 48, 32>}, {pipeline_mode = #tpu.pipeline_mode<synchronous>, transform_indices = @transform_2, window_bounds = array<i64: 1, 32, 32>}, {transform_indices = @transform_3, window_bounds = array<i64: 1, 1, 32>}, {transform_indices = @transform_4, window_bounds = array<i64: 1, 1, 32>}, {transform_indices = @transform_5, window_bounds = array<i64: 1, 32, 96>}, {transform_indices = @transform_6, window_bounds = array<i64: 1, 1, 96>}, {transform_indices = @transform_7, window_bounds = array<i64: 1, 32, 32>}, {transform_indices = @transform_8, window_bounds = array<i64: 1, 1, 32>}, {transform_indices = @transform_9, window_bounds = array<i64: 1, 1, 32>}, {transform_indices = @transform_10, window_bounds = array<i64: 1, 1, 32>}, {transform_indices = @transform_11, window_bounds = array<i64: 1, 1, 32>}, {transform_indices = @transform_12, window_bounds = array<i64: 1, 32, 64>}, {transform_indices = @transform_13, window_bounds = array<i64: 1, 1, 64>}, {transform_indices = @transform_14, window_bounds = array<i64: 1, 64, 32>}, {transform_indices = @transform_15, window_bounds = array<i64: 1, 1, 32>}, {transform_indices = @transform_16, window_bounds = array<i64: 1, 1, 32>}, {pipeline_mode = #tpu.pipeline_mode<synchronous>, transform_indices = @transform_17, window_bounds = array<i64: 1, 32>}, {pipeline_mode = #tpu.pipeline_mode<synchronous>, transform_indices = @transform_18, window_bounds = array<i64: 1, 32>}, {transform_indices = @transform_19, window_bounds = array<i64: 1, 1, 32>}]} {
    %c0_i32 = arith.constant 0 : i32
    %0 = arith.cmpi eq, %arg1, %c0_i32 : i32
    %1 = arith.extui %0 : i1 to i32
    %c0_i32_0 = arith.constant 0 : i32
    %2 = arith.cmpi ne, %1, %c0_i32_0 : i32
    scf.if %2 {
      %c0_74 = arith.constant 0 : index
      %c0_75 = arith.constant 0 : index
      %c0_76 = arith.constant 0 : index
      %166 = vector.load %arg2[%c0_74, %c0_75, %c0_76] : memref<1x32x48xbf16, #tpu.memory_space<vmem>>, vector<1x32x48xbf16>
      %167 = vector.shape_cast %166 : vector<1x32x48xbf16> to vector<32x48xbf16>
      %c0_77 = arith.constant 0 : index
      %c0_78 = arith.constant 0 : index
      %168 = vector.load %arg3[%c0_77, %c0_78] : memref<48x32xbf16, #tpu.memory_space<vmem>>, vector<48x32xbf16>
      %cst_79 = arith.constant dense<0.000000e+00> : vector<32x32xf32>
      %169 = tpu.matmul %167, %168, %cst_79 {dimension_numbers = #tpu.dot_dimension_numbers<[1], [0], [0], [1], [0, 0, 1, 1], [], []>} : vector<32x48xbf16>, vector<48x32xbf16>, vector<32x32xf32> -> vector<32x32xf32>
      %c0_80 = arith.constant 0 : index
      %c0_81 = arith.constant 0 : index
      %c0_82 = arith.constant 0 : index
      %170 = vector.load %arg4[%c0_80, %c0_81, %c0_82] : memref<1x32x32xf32, #tpu.memory_space<vmem>>, vector<1x32x32xf32>
      %171 = vector.shape_cast %170 : vector<1x32x32xf32> to vector<32x32xf32>
      %172 = arith.addf %169, %171 : vector<32x32xf32>
      %c0_83 = arith.constant 0 : index
      %c0_84 = arith.constant 0 : index
      %173 = vector.load %arg22[%c0_83, %c0_84] : memref<32x32xf32, #tpu.memory_space<vmem>>, vector<32x32xf32>
      tpu.vector_store %arg22[%c0_83, %c0_84], %172 {strides = array<i32>} : memref<32x32xf32, #tpu.memory_space<vmem>>, vector<32x32xf32>,
    } else {
    }
    %c0 = arith.constant 0 : index
    %c0_1 = arith.constant 0 : index
    %3 = vector.load %arg22[%c0, %c0_1] : memref<32x32xf32, #tpu.memory_space<vmem>>, vector<32x32xf32>
    %4 = tpu.iota {dimensions = array<i32: 1>} : vector<1x32xi32>
    %c17_i32 = arith.constant 17 : i32
    %5 = vector.broadcast %c17_i32 : i32 to vector<1x32xi32>
    %6 = arith.cmpi slt, %4, %5 : vector<1x32xi32>
    %cst = arith.constant 0.000000e+00 : f32
    %cst_2 = arith.constant -1.000000e+30 : f32
    %7 = vector.broadcast %cst : f32 to vector<1x32xf32>
    %8 = vector.broadcast %cst_2 : f32 to vector<1x32xf32>
    %9 = arith.select %6, %7, %8 : vector<1x32xi1>, vector<1x32xf32>
    %c0_3 = arith.constant 0 : index
    %c0_4 = arith.constant 0 : index
    %c0_5 = arith.constant 0 : index
    %10 = vector.load %arg5[%c0_3, %c0_4, %c0_5] : memref<1x1x32xf32, #tpu.memory_space<vmem>>, vector<1x1x32xf32>
    %11 = vector.shape_cast %10 : vector<1x1x32xf32> to vector<1x32xf32>
    %c0_6 = arith.constant 0 : index
    %c0_7 = arith.constant 0 : index
    %c0_8 = arith.constant 0 : index
    %12 = vector.load %arg6[%c0_6, %c0_7, %c0_8] : memref<1x1x32xf32, #tpu.memory_space<vmem>>, vector<1x1x32xf32>
    %13 = vector.shape_cast %12 : vector<1x1x32xf32> to vector<1x32xf32>
    %cst_9 = arith.constant dense<0.000000e+00> : vector<32xf32>
    %14 = vector.multi_reduction <add>, %3, %cst_9 [1] : vector<32x32xf32> to vector<32xf32>
    %15 = vector.shape_cast %14 : vector<32xf32> to vector<32x1xf32>
    %cst_10 = arith.constant 3.200000e+01 : f32
    %16 = vector.broadcast %cst_10 : f32 to vector<32x1xf32>
    %17 = arith.divf %15, %16 : vector<32x1xf32>
    %18 = vector.broadcast %17 : vector<32x1xf32> to vector<32x32xf32>
    %19 = arith.subf %3, %18 : vector<32x32xf32>
    %20 = arith.mulf %19, %19 : vector<32x32xf32>
    %cst_11 = arith.constant dense<0.000000e+00> : vector<32xf32>
    %21 = vector.multi_reduction <add>, %20, %cst_11 [1] : vector<32x32xf32> to vector<32xf32>
    %22 = vector.shape_cast %21 : vector<32xf32> to vector<32x1xf32>
    %cst_12 = arith.constant 3.200000e+01 : f32
    %23 = vector.broadcast %cst_12 : f32 to vector<32x1xf32>
    %24 = arith.divf %22, %23 : vector<32x1xf32>
    %25 = vector.broadcast %17 : vector<32x1xf32> to vector<32x32xf32>
    %26 = arith.subf %3, %25 : vector<32x32xf32>
    %cst_13 = arith.constant 9.99999997E-7 : f32
    %27 = vector.broadcast %cst_13 : f32 to vector<32x1xf32>
    %28 = arith.addf %24, %27 : vector<32x1xf32>
    %29 = math.rsqrt %28 : vector<32x1xf32>
    %30 = vector.broadcast %29 : vector<32x1xf32> to vector<32x32xf32>
    %31 = arith.mulf %26, %30 : vector<32x32xf32>
    %32 = vector.broadcast %11 : vector<1x32xf32> to vector<32x32xf32>
    %33 = arith.mulf %31, %32 : vector<32x32xf32>
    %34 = vector.broadcast %13 : vector<1x32xf32> to vector<32x32xf32>
    %35 = arith.addf %33, %34 : vector<32x32xf32>
    %36 = arith.truncf %35 : vector<32x32xf32> to vector<32x32xbf16>
    %c0_14 = arith.constant 0 : index
    %c0_15 = arith.constant 0 : index
    %c0_16 = arith.constant 0 : index
    %37 = vector.load %arg7[%c0_14, %c0_15, %c0_16] : memref<1x32x96xbf16, #tpu.memory_space<vmem>>, vector<1x32x96xbf16>
    %38 = vector.shape_cast %37 : vector<1x32x96xbf16> to vector<32x96xbf16>
    %cst_17 = arith.constant dense<0.000000e+00> : vector<32x96xf32>
    %39 = tpu.matmul %36, %38, %cst_17 {dimension_numbers = #tpu.dot_dimension_numbers<[1], [0], [0], [1], [0, 0, 1, 1], [], []>} : vector<32x32xbf16>, vector<32x96xbf16>, vector<32x96xf32> -> vector<32x96xf32>
    %c0_18 = arith.constant 0 : index
    %c0_19 = arith.constant 0 : index
    %c0_20 = arith.constant 0 : index
    %40 = vector.load %arg8[%c0_18, %c0_19, %c0_20] : memref<1x1x96xf32, #tpu.memory_space<vmem>>, vector<1x1x96xf32>
    %41 = vector.shape_cast %40 : vector<1x1x96xf32> to vector<1x96xf32>
    %42 = vector.broadcast %41 : vector<1x96xf32> to vector<32x96xf32>
    %43 = arith.addf %39, %42 : vector<32x96xf32>
    %44 = vector.extract_strided_slice %43 {offsets = [0, 0], sizes = [32, 16], strides = [1, 1]} : vector<32x96xf32> to vector<32x16xf32>
    %45 = vector.extract_strided_slice %43 {offsets = [0, 32], sizes = [32, 16], strides = [1, 1]} : vector<32x96xf32> to vector<32x16xf32>
    %46 = vector.extract_strided_slice %43 {offsets = [0, 64], sizes = [32, 16], strides = [1, 1]} : vector<32x96xf32> to vector<32x16xf32>
    %47 = arith.truncf %44 : vector<32x16xf32> to vector<32x16xbf16>
    %48 = tpu.transpose %45, [1, 0] : vector<32x16xf32> -> vector<16x32xf32>
    %49 = arith.truncf %48 : vector<16x32xf32> to vector<16x32xbf16>
    %cst_21 = arith.constant dense<0.000000e+00> : vector<32x32xf32>
    %50 = tpu.matmul %47, %49, %cst_21 {dimension_numbers = #tpu.dot_dimension_numbers<[1], [0], [0], [1], [0, 0, 1, 1], [], []>} : vector<32x16xbf16>, vector<16x32xbf16>, vector<32x32xf32> -> vector<32x32xf32>
    %51 = vector.broadcast %9 : vector<1x32xf32> to vector<32x32xf32>
    %52 = arith.addf %50, %51 : vector<32x32xf32>
    %cst_22 = arith.constant dense<0xFF800000> : vector<32xf32>
    %53 = vector.multi_reduction <maximumf>, %52, %cst_22 [1] : vector<32x32xf32> to vector<32xf32>
    %54 = vector.shape_cast %53 : vector<32xf32> to vector<32x1xf32>
    %55 = vector.broadcast %54 : vector<32x1xf32> to vector<32x32xf32>
    %56 = arith.subf %52, %55 : vector<32x32xf32>
    %57 = math.exp %56 : vector<32x32xf32>
    %cst_23 = arith.constant dense<0.000000e+00> : vector<32xf32>
    %58 = vector.multi_reduction <add>, %57, %cst_23 [1] : vector<32x32xf32> to vector<32xf32>
    %59 = vector.shape_cast %58 : vector<32xf32> to vector<32x1xf32>
    %60 = tpu.reciprocal %59 {approx = true} : vector<32x1xf32> -> vector<32x1xf32>
    %61 = vector.broadcast %60 : vector<32x1xf32> to vector<32x32xf32>
    %62 = arith.mulf %57, %61 : vector<32x32xf32>
    %63 = arith.truncf %62 : vector<32x32xf32> to vector<32x32xbf16>
    %64 = arith.truncf %46 : vector<32x16xf32> to vector<32x16xbf16>
    %cst_24 = arith.constant dense<0.000000e+00> : vector<32x16xf32>
    %65 = tpu.matmul %63, %64, %cst_24 {dimension_numbers = #tpu.dot_dimension_numbers<[1], [0], [0], [1], [0, 0, 1, 1], [], []>} : vector<32x32xbf16>, vector<32x16xbf16>, vector<32x16xf32> -> vector<32x16xf32>
    %66 = vector.extract_strided_slice %43 {offsets = [0, 16], sizes = [32, 16], strides = [1, 1]} : vector<32x96xf32> to vector<32x16xf32>
    %67 = vector.extract_strided_slice %43 {offsets = [0, 48], sizes = [32, 16], strides = [1, 1]} : vector<32x96xf32> to vector<32x16xf32>
    %68 = vector.extract_strided_slice %43 {offsets = [0, 80], sizes = [32, 16], strides = [1, 1]} : vector<32x96xf32> to vector<32x16xf32>
    %69 = arith.truncf %66 : vector<32x16xf32> to vector<32x16xbf16>
    %70 = tpu.transpose %67, [1, 0] : vector<32x16xf32> -> vector<16x32xf32>
    %71 = arith.truncf %70 : vector<16x32xf32> to vector<16x32xbf16>
    %cst_25 = arith.constant dense<0.000000e+00> : vector<32x32xf32>
    %72 = tpu.matmul %69, %71, %cst_25 {dimension_numbers = #tpu.dot_dimension_numbers<[1], [0], [0], [1], [0, 0, 1, 1], [], []>} : vector<32x16xbf16>, vector<16x32xbf16>, vector<32x32xf32> -> vector<32x32xf32>
    %73 = vector.broadcast %9 : vector<1x32xf32> to vector<32x32xf32>
    %74 = arith.addf %72, %73 : vector<32x32xf32>
    %cst_26 = arith.constant dense<0xFF800000> : vector<32xf32>
    %75 = vector.multi_reduction <maximumf>, %74, %cst_26 [1] : vector<32x32xf32> to vector<32xf32>
    %76 = vector.shape_cast %75 : vector<32xf32> to vector<32x1xf32>
    %77 = vector.broadcast %76 : vector<32x1xf32> to vector<32x32xf32>
    %78 = arith.subf %74, %77 : vector<32x32xf32>
    %79 = math.exp %78 : vector<32x32xf32>
    %cst_27 = arith.constant dense<0.000000e+00> : vector<32xf32>
    %80 = vector.multi_reduction <add>, %79, %cst_27 [1] : vector<32x32xf32> to vector<32xf32>
    %81 = vector.shape_cast %80 : vector<32xf32> to vector<32x1xf32>
    %82 = tpu.reciprocal %81 {approx = true} : vector<32x1xf32> -> vector<32x1xf32>
    %83 = vector.broadcast %82 : vector<32x1xf32> to vector<32x32xf32>
    %84 = arith.mulf %79, %83 : vector<32x32xf32>
    %85 = arith.truncf %84 : vector<32x32xf32> to vector<32x32xbf16>
    %86 = arith.truncf %68 : vector<32x16xf32> to vector<32x16xbf16>
    %cst_28 = arith.constant dense<0.000000e+00> : vector<32x16xf32>
    %87 = tpu.matmul %85, %86, %cst_28 {dimension_numbers = #tpu.dot_dimension_numbers<[1], [0], [0], [1], [0, 0, 1, 1], [], []>} : vector<32x32xbf16>, vector<32x16xbf16>, vector<32x16xf32> -> vector<32x16xf32>
    %88 = tpu.concatenate %65, %87 in 1 : vector<32x16xf32>, vector<32x16xf32> -> vector<32x32xf32>
    %89 = arith.truncf %88 : vector<32x32xf32> to vector<32x32xbf16>
    %c0_29 = arith.constant 0 : index
    %c0_30 = arith.constant 0 : index
    %c0_31 = arith.constant 0 : index
    %90 = vector.load %arg9[%c0_29, %c0_30, %c0_31] : memref<1x32x32xbf16, #tpu.memory_space<vmem>>, vector<1x32x32xbf16>
    %91 = vector.shape_cast %90 : vector<1x32x32xbf16> to vector<32x32xbf16>
    %cst_32 = arith.constant dense<0.000000e+00> : vector<32x32xf32>
    %92 = tpu.matmul %89, %91, %cst_32 {dimension_numbers = #tpu.dot_dimension_numbers<[1], [0], [0], [1], [0, 0, 1, 1], [], []>} : vector<32x32xbf16>, vector<32x32xbf16>, vector<32x32xf32> -> vector<32x32xf32>
    %c0_33 = arith.constant 0 : index
    %c0_34 = arith.constant 0 : index
    %c0_35 = arith.constant 0 : index
    %93 = vector.load %arg10[%c0_33, %c0_34, %c0_35] : memref<1x1x32xf32, #tpu.memory_space<vmem>>, vector<1x1x32xf32>
    %94 = vector.shape_cast %93 : vector<1x1x32xf32> to vector<1x32xf32>
    %95 = vector.broadcast %94 : vector<1x32xf32> to vector<32x32xf32>
    %96 = arith.addf %92, %95 : vector<32x32xf32>
    %c0_36 = arith.constant 0 : index
    %c0_37 = arith.constant 0 : index
    %c0_38 = arith.constant 0 : index
    %97 = vector.load %arg11[%c0_36, %c0_37, %c0_38] : memref<1x1x32xf32, #tpu.memory_space<vmem>>, vector<1x1x32xf32>
    %98 = vector.shape_cast %97 : vector<1x1x32xf32> to vector<1x32xf32>
    %99 = vector.broadcast %98 : vector<1x32xf32> to vector<32x32xf32>
    %100 = arith.mulf %99, %96 : vector<32x32xf32>
    %101 = arith.addf %3, %100 : vector<32x32xf32>
    %c0_39 = arith.constant 0 : index
    %c0_40 = arith.constant 0 : index
    %c0_41 = arith.constant 0 : index
    %102 = vector.load %arg12[%c0_39, %c0_40, %c0_41] : memref<1x1x32xf32, #tpu.memory_space<vmem>>, vector<1x1x32xf32>
    %103 = vector.shape_cast %102 : vector<1x1x32xf32> to vector<1x32xf32>
    %c0_42 = arith.constant 0 : index
    %c0_43 = arith.constant 0 : index
    %c0_44 = arith.constant 0 : index
    %104 = vector.load %arg13[%c0_42, %c0_43, %c0_44] : memref<1x1x32xf32, #tpu.memory_space<vmem>>, vector<1x1x32xf32>
    %105 = vector.shape_cast %104 : vector<1x1x32xf32> to vector<1x32xf32>
    %cst_45 = arith.constant dense<0.000000e+00> : vector<32xf32>
    %106 = vector.multi_reduction <add>, %101, %cst_45 [1] : vector<32x32xf32> to vector<32xf32>
    %107 = vector.shape_cast %106 : vector<32xf32> to vector<32x1xf32>
    %cst_46 = arith.constant 3.200000e+01 : f32
    %108 = vector.broadcast %cst_46 : f32 to vector<32x1xf32>
    %109 = arith.divf %107, %108 : vector<32x1xf32>
    %110 = vector.broadcast %109 : vector<32x1xf32> to vector<32x32xf32>
    %111 = arith.subf %101, %110 : vector<32x32xf32>
    %112 = arith.mulf %111, %111 : vector<32x32xf32>
    %cst_47 = arith.constant dense<0.000000e+00> : vector<32xf32>
    %113 = vector.multi_reduction <add>, %112, %cst_47 [1] : vector<32x32xf32> to vector<32xf32>
    %114 = vector.shape_cast %113 : vector<32xf32> to vector<32x1xf32>
    %cst_48 = arith.constant 3.200000e+01 : f32
    %115 = vector.broadcast %cst_48 : f32 to vector<32x1xf32>
    %116 = arith.divf %114, %115 : vector<32x1xf32>
    %117 = vector.broadcast %109 : vector<32x1xf32> to vector<32x32xf32>
    %118 = arith.subf %101, %117 : vector<32x32xf32>
    %cst_49 = arith.constant 9.99999997E-7 : f32
    %119 = vector.broadcast %cst_49 : f32 to vector<32x1xf32>
    %120 = arith.addf %116, %119 : vector<32x1xf32>
    %121 = math.rsqrt %120 : vector<32x1xf32>
    %122 = vector.broadcast %121 : vector<32x1xf32> to vector<32x32xf32>
    %123 = arith.mulf %118, %122 : vector<32x32xf32>
    %124 = vector.broadcast %103 : vector<1x32xf32> to vector<32x32xf32>
    %125 = arith.mulf %123, %124 : vector<32x32xf32>
    %126 = vector.broadcast %105 : vector<1x32xf32> to vector<32x32xf32>
    %127 = arith.addf %125, %126 : vector<32x32xf32>
    %128 = arith.truncf %127 : vector<32x32xf32> to vector<32x32xbf16>
    %c0_50 = arith.constant 0 : index
    %c0_51 = arith.constant 0 : index
    %c0_52 = arith.constant 0 : index
    %129 = vector.load %arg14[%c0_50, %c0_51, %c0_52] : memref<1x32x64xbf16, #tpu.memory_space<vmem>>, vector<1x32x64xbf16>
    %130 = vector.shape_cast %129 : vector<1x32x64xbf16> to vector<32x64xbf16>
    %cst_53 = arith.constant dense<0.000000e+00> : vector<32x64xf32>
    %131 = tpu.matmul %128, %130, %cst_53 {dimension_numbers = #tpu.dot_dimension_numbers<[1], [0], [0], [1], [0, 0, 1, 1], [], []>} : vector<32x32xbf16>, vector<32x64xbf16>, vector<32x64xf32> -> vector<32x64xf32>
    %c0_54 = arith.constant 0 : index
    %c0_55 = arith.constant 0 : index
    %c0_56 = arith.constant 0 : index
    %132 = vector.load %arg15[%c0_54, %c0_55, %c0_56] : memref<1x1x64xf32, #tpu.memory_space<vmem>>, vector<1x1x64xf32>
    %133 = vector.shape_cast %132 : vector<1x1x64xf32> to vector<1x64xf32>
    %134 = vector.broadcast %133 : vector<1x64xf32> to vector<32x64xf32>
    %135 = arith.addf %131, %134 : vector<32x64xf32>
    %136 = arith.mulf %135, %135 : vector<32x64xf32>
    %137 = arith.mulf %135, %136 : vector<32x64xf32>
    %cst_57 = arith.constant 4.471500e-02 : f32
    %138 = vector.broadcast %cst_57 : f32 to vector<32x64xf32>
    %139 = arith.mulf %138, %137 : vector<32x64xf32>
    %140 = arith.addf %135, %139 : vector<32x64xf32>
    %cst_58 = arith.constant 0.797884583 : f32
    %141 = vector.broadcast %cst_58 : f32 to vector<32x64xf32>
    %142 = arith.mulf %141, %140 : vector<32x64xf32>
    %143 = math.tanh %142 : vector<32x64xf32>
    %cst_59 = arith.constant 1.000000e+00 : f32
    %144 = vector.broadcast %cst_59 : f32 to vector<32x64xf32>
    %145 = arith.addf %144, %143 : vector<32x64xf32>
    %cst_60 = arith.constant 5.000000e-01 : f32
    %146 = vector.broadcast %cst_60 : f32 to vector<32x64xf32>
    %147 = arith.mulf %146, %145 : vector<32x64xf32>
    %148 = arith.mulf %135, %147 : vector<32x64xf32>
    %149 = arith.truncf %148 : vector<32x64xf32> to vector<32x64xbf16>
    %c0_61 = arith.constant 0 : index
    %c0_62 = arith.constant 0 : index
    %c0_63 = arith.constant 0 : index
    %150 = vector.load %arg16[%c0_61, %c0_62, %c0_63] : memref<1x64x32xbf16, #tpu.memory_space<vmem>>, vector<1x64x32xbf16>
    %151 = vector.shape_cast %150 : vector<1x64x32xbf16> to vector<64x32xbf16>
    %cst_64 = arith.constant dense<0.000000e+00> : vector<32x32xf32>
    %152 = tpu.matmul %149, %151, %cst_64 {dimension_numbers = #tpu.dot_dimension_numbers<[1], [0], [0], [1], [0, 0, 1, 1], [], []>} : vector<32x64xbf16>, vector<64x32xbf16>, vector<32x32xf32> -> vector<32x32xf32>
    %c0_65 = arith.constant 0 : index
    %c0_66 = arith.constant 0 : index
    %c0_67 = arith.constant 0 : index
    %153 = vector.load %arg17[%c0_65, %c0_66, %c0_67] : memref<1x1x32xf32, #tpu.memory_space<vmem>>, vector<1x1x32xf32>
    %154 = vector.shape_cast %153 : vector<1x1x32xf32> to vector<1x32xf32>
    %155 = vector.broadcast %154 : vector<1x32xf32> to vector<32x32xf32>
    %156 = arith.addf %152, %155 : vector<32x32xf32>
    %c0_68 = arith.constant 0 : index
    %c0_69 = arith.constant 0 : index
    %c0_70 = arith.constant 0 : index
    %157 = vector.load %arg18[%c0_68, %c0_69, %c0_70] : memref<1x1x32xf32, #tpu.memory_space<vmem>>, vector<1x1x32xf32>
    %158 = vector.shape_cast %157 : vector<1x1x32xf32> to vector<1x32xf32>
    %159 = vector.broadcast %158 : vector<1x32xf32> to vector<32x32xf32>
    %160 = arith.mulf %159, %156 : vector<32x32xf32>
    %161 = arith.addf %101, %160 : vector<32x32xf32>
    %c0_71 = arith.constant 0 : index
    %c0_72 = arith.constant 0 : index
    %162 = vector.load %arg22[%c0_71, %c0_72] : memref<32x32xf32, #tpu.memory_space<vmem>>, vector<32x32xf32>
    tpu.vector_store %arg22[%c0_71, %c0_72], %161 {strides = array<i32>} : memref<32x32xf32, #tpu.memory_space<vmem>>, vector<32x32xf32>,
    %c1_i32 = arith.constant 1 : i32
    %163 = arith.cmpi eq, %arg1, %c1_i32 : i32
    %164 = arith.extui %163 : i1 to i32
    %c0_i32_73 = arith.constant 0 : i32
    %165 = arith.cmpi ne, %164, %c0_i32_73 : i32
    scf.if %165 {
      %166 = vector.extract_strided_slice %161 {offsets = [0, 0], sizes = [1, 32], strides = [1, 1]} : vector<32x32xf32> to vector<1x32xf32>
      %c0_74 = arith.constant 0 : index
      %c0_75 = arith.constant 0 : index
      %167 = vector.load %arg19[%c0_74, %c0_75] : memref<1x32xf32, #tpu.memory_space<vmem>>, vector<1x32xf32>
      %c0_76 = arith.constant 0 : index
      %c0_77 = arith.constant 0 : index
      %168 = vector.load %arg20[%c0_76, %c0_77] : memref<1x32xf32, #tpu.memory_space<vmem>>, vector<1x32xf32>
      %cst_78 = arith.constant dense<0.000000e+00> : vector<1xf32>
      %169 = vector.multi_reduction <add>, %166, %cst_78 [1] : vector<1x32xf32> to vector<1xf32>
      %170 = vector.shape_cast %169 : vector<1xf32> to vector<1x1xf32>
      %cst_79 = arith.constant 3.200000e+01 : f32
      %171 = vector.broadcast %cst_79 : f32 to vector<1x1xf32>
      %172 = arith.divf %170, %171 : vector<1x1xf32>
      %173 = vector.broadcast %172 : vector<1x1xf32> to vector<1x32xf32>
      %174 = arith.subf %166, %173 : vector<1x32xf32>
      %175 = arith.mulf %174, %174 : vector<1x32xf32>
      %cst_80 = arith.constant dense<0.000000e+00> : vector<1xf32>
      %176 = vector.multi_reduction <add>, %175, %cst_80 [1] : vector<1x32xf32> to vector<1xf32>
      %177 = vector.shape_cast %176 : vector<1xf32> to vector<1x1xf32>
      %cst_81 = arith.constant 3.200000e+01 : f32
      %178 = vector.broadcast %cst_81 : f32 to vector<1x1xf32>
      %179 = arith.divf %177, %178 : vector<1x1xf32>
      %180 = vector.broadcast %172 : vector<1x1xf32> to vector<1x32xf32>
      %181 = arith.subf %166, %180 : vector<1x32xf32>
      %cst_82 = arith.constant 9.99999997E-7 : f32
      %182 = vector.broadcast %cst_82 : f32 to vector<1x1xf32>
      %183 = arith.addf %179, %182 : vector<1x1xf32>
      %184 = math.rsqrt %183 : vector<1x1xf32>
      %185 = vector.broadcast %184 : vector<1x1xf32> to vector<1x32xf32>
      %186 = arith.mulf %181, %185 : vector<1x32xf32>
      %187 = arith.mulf %186, %167 : vector<1x32xf32>
      %188 = arith.addf %187, %168 : vector<1x32xf32>
      %c0_83 = arith.constant 0 : index
      %c0_84 = arith.constant 0 : index
      %c0_85 = arith.constant 0 : index
      %189 = vector.load %arg21[%c0_83, %c0_84, %c0_85] : memref<1x1x32xf32, #tpu.memory_space<vmem>>, vector<1x1x32xf32>
      %190 = vector.shape_cast %189 : vector<1x1x32xf32> to vector<1x32xf32>
      %191 = vector.shape_cast %188 : vector<1x32xf32> to vector<1x1x32xf32>
      tpu.vector_store %arg21[%c0_83, %c0_84, %c0_85], %191 {strides = array<i32>} : memref<1x1x32xf32, #tpu.memory_space<vmem>>, vector<1x1x32xf32>,
    } else {
    }
    return
  }
  func.func @transform_0(%arg0: i32, %arg1: i32) -> (i32, i32, i32) {
    %c0_i32 = arith.constant 0 : i32
    %c0_i32_0 = arith.constant 0 : i32
    %c0_i32_1 = arith.constant 0 : i32
    return %arg0, %c0_i32, %c0_i32_0 : i32, i32, i32
  }
  func.func @transform_1(%arg0: i32, %arg1: i32) -> (i32, i32) {
    %c0_i32 = arith.constant 0 : i32
    %c0_i32_0 = arith.constant 0 : i32
    %c0_i32_1 = arith.constant 0 : i32
    return %c0_i32, %c0_i32_0 : i32, i32
  }
  func.func @transform_2(%arg0: i32, %arg1: i32) -> (i32, i32, i32) {
    %c0_i32 = arith.constant 0 : i32
    %c0_i32_0 = arith.constant 0 : i32
    %c0_i32_1 = arith.constant 0 : i32
    %c0_i32_2 = arith.constant 0 : i32
    return %c0_i32, %c0_i32_0, %c0_i32_1 : i32, i32, i32
  }
  func.func @transform_3(%arg0: i32, %arg1: i32) -> (i32, i32, i32) {
    %c0_i32 = arith.constant 0 : i32
    %c0_i32_0 = arith.constant 0 : i32
    %c0_i32_1 = arith.constant 0 : i32
    return %arg1, %c0_i32, %c0_i32_0 : i32, i32, i32
  }
  func.func @transform_4(%arg0: i32, %arg1: i32) -> (i32, i32, i32) {
    %c0_i32 = arith.constant 0 : i32
    %c0_i32_0 = arith.constant 0 : i32
    %c0_i32_1 = arith.constant 0 : i32
    return %arg1, %c0_i32, %c0_i32_0 : i32, i32, i32
  }
  func.func @transform_5(%arg0: i32, %arg1: i32) -> (i32, i32, i32) {
    %c0_i32 = arith.constant 0 : i32
    %c0_i32_0 = arith.constant 0 : i32
    %c0_i32_1 = arith.constant 0 : i32
    return %arg1, %c0_i32, %c0_i32_0 : i32, i32, i32
  }
  func.func @transform_6(%arg0: i32, %arg1: i32) -> (i32, i32, i32) {
    %c0_i32 = arith.constant 0 : i32
    %c0_i32_0 = arith.constant 0 : i32
    %c0_i32_1 = arith.constant 0 : i32
    return %arg1, %c0_i32, %c0_i32_0 : i32, i32, i32
  }
  func.func @transform_7(%arg0: i32, %arg1: i32) -> (i32, i32, i32) {
    %c0_i32 = arith.constant 0 : i32
    %c0_i32_0 = arith.constant 0 : i32
    %c0_i32_1 = arith.constant 0 : i32
    return %arg1, %c0_i32, %c0_i32_0 : i32, i32, i32
  }
  func.func @transform_8(%arg0: i32, %arg1: i32) -> (i32, i32, i32) {
    %c0_i32 = arith.constant 0 : i32
    %c0_i32_0 = arith.constant 0 : i32
    %c0_i32_1 = arith.constant 0 : i32
    return %arg1, %c0_i32, %c0_i32_0 : i32, i32, i32
  }
  func.func @transform_9(%arg0: i32, %arg1: i32) -> (i32, i32, i32) {
    %c0_i32 = arith.constant 0 : i32
    %c0_i32_0 = arith.constant 0 : i32
    %c0_i32_1 = arith.constant 0 : i32
    return %arg1, %c0_i32, %c0_i32_0 : i32, i32, i32
  }
  func.func @transform_10(%arg0: i32, %arg1: i32) -> (i32, i32, i32) {
    %c0_i32 = arith.constant 0 : i32
    %c0_i32_0 = arith.constant 0 : i32
    %c0_i32_1 = arith.constant 0 : i32
    return %arg1, %c0_i32, %c0_i32_0 : i32, i32, i32
  }
  func.func @transform_11(%arg0: i32, %arg1: i32) -> (i32, i32, i32) {
    %c0_i32 = arith.constant 0 : i32
    %c0_i32_0 = arith.constant 0 : i32
    %c0_i32_1 = arith.constant 0 : i32
    return %arg1, %c0_i32, %c0_i32_0 : i32, i32, i32
  }
  func.func @transform_12(%arg0: i32, %arg1: i32) -> (i32, i32, i32) {
    %c0_i32 = arith.constant 0 : i32
    %c0_i32_0 = arith.constant 0 : i32
    %c0_i32_1 = arith.constant 0 : i32
    return %arg1, %c0_i32, %c0_i32_0 : i32, i32, i32
  }
  func.func @transform_13(%arg0: i32, %arg1: i32) -> (i32, i32, i32) {
    %c0_i32 = arith.constant 0 : i32
    %c0_i32_0 = arith.constant 0 : i32
    %c0_i32_1 = arith.constant 0 : i32
    return %arg1, %c0_i32, %c0_i32_0 : i32, i32, i32
  }
  func.func @transform_14(%arg0: i32, %arg1: i32) -> (i32, i32, i32) {
    %c0_i32 = arith.constant 0 : i32
    %c0_i32_0 = arith.constant 0 : i32
    %c0_i32_1 = arith.constant 0 : i32
    return %arg1, %c0_i32, %c0_i32_0 : i32, i32, i32
  }
  func.func @transform_15(%arg0: i32, %arg1: i32) -> (i32, i32, i32) {
    %c0_i32 = arith.constant 0 : i32
    %c0_i32_0 = arith.constant 0 : i32
    %c0_i32_1 = arith.constant 0 : i32
    return %arg1, %c0_i32, %c0_i32_0 : i32, i32, i32
  }
  func.func @transform_16(%arg0: i32, %arg1: i32) -> (i32, i32, i32) {
    %c0_i32 = arith.constant 0 : i32
    %c0_i32_0 = arith.constant 0 : i32
    %c0_i32_1 = arith.constant 0 : i32
    return %arg1, %c0_i32, %c0_i32_0 : i32, i32, i32
  }
  func.func @transform_17(%arg0: i32, %arg1: i32) -> (i32, i32) {
    %c0_i32 = arith.constant 0 : i32
    %c0_i32_0 = arith.constant 0 : i32
    %c0_i32_1 = arith.constant 0 : i32
    return %c0_i32, %c0_i32_0 : i32, i32
  }
  func.func @transform_18(%arg0: i32, %arg1: i32) -> (i32, i32) {
    %c0_i32 = arith.constant 0 : i32
    %c0_i32_0 = arith.constant 0 : i32
    %c0_i32_1 = arith.constant 0 : i32
    return %c0_i32, %c0_i32_0 : i32, i32
  }
  func.func @transform_19(%arg0: i32, %arg1: i32) -> (i32, i32, i32) {
    %c0_i32 = arith.constant 0 : i32
    %c0_i32_0 = arith.constant 0 : i32
    %c0_i32_1 = arith.constant 0 : i32
    return %arg0, %c0_i32, %c0_i32_0 : i32, i32, i32
  }
}

</mosaic_0001>

<bundles_post_ra>
// kernel: raddino_backbone_forward.1
= control target key start
LH: loop header
LB: loop body
LE: loop exit
PB: predicated region body
PF: predicated region fallthrough
CT: control target
= control target key end

     0   :  { %s3173_s0 = inlined_call_operand.vmem [shape: bf16[2,32,48], index: 0, kind: input, shape index: {}]   ;;  %s3174_s1 = inlined_call_operand.vmem [shape: bf16[48,32], index: 1, kind: input, shape index: {}]   ;;  %s3175_s2 = inlined_call_operand.vmem [shape: f32[1,32,32], index: 2, kind: input, shape index: {}]   ;;  %s3176_s3 = inlined_call_operand.vmem [shape: f32[2,1,32], index: 3, kind: input, shape index: {}]   ;;  %s3177_s4 = inlined_call_operand.vmem [shape: f32[2,1,32], index: 4, kind: input, shape index: {}]   ;;  %s3178_s5 = inlined_call_operand.vmem [shape: bf16[2,32,96], index: 5, kind: input, shape index: {}]   ;;  %s3179_s6 = inlined_call_operand.vmem [shape: f32[2,1,96], index: 6, kind: input, shape index: {}]   ;;  %s3180_s7 = inlined_call_operand.vmem [shape: bf16[2,32,32], index: 7, kind: input, shape index: {}]   ;;  %s3181_s8 = inlined_call_operand.vmem [shape: f32[2,1,32], index: 8, kind: input, shape index: {}]   ;;  %s3182_s9 = inlined_call_operand.vmem [shape: f32[2,1,32], index: 9, kind: input, shape index: {}]   ;;  %s3183_s10 = inlined_call_operand.vmem [shape: f32[2,1,32], index: 10, kind: input, shape index: {}]   ;;  %s3184_s11 = inlined_call_operand.vmem [shape: f32[2,1,32], index: 11, kind: input, shape index: {}]   ;;  %s3185_s12 = inlined_call_operand.vmem [shape: bf16[2,32,64], index: 12, kind: input, shape index: {}]   ;;  %s3186_s13 = inlined_call_operand.vmem [shape: f32[2,1,64], index: 13, kind: input, shape index: {}]   ;;  %s3187_s14 = inlined_call_operand.vmem [shape: bf16[2,64,32], index: 14, kind: input, shape index: {}]   ;;  %s3188_s15 = inlined_call_operand.vmem [shape: f32[2,1,32], index: 15, kind: input, shape index: {}]   ;;  %s3189_s16 = inlined_call_operand.vmem [shape: f32[2,1,32], index: 16, kind: input, shape index: {}]   ;;  %s3190_s17 = inlined_call_operand.vmem [shape: f32[1,32], index: 17, kind: input, shape index: {}]   ;;  %s3191_s18 = inlined_call_operand.vmem [shape: f32[1,32], index: 18, kind: input, shape index: {}]   ;;  %s3192_s19 = inlined_call_operand.hbm [shape: f32[2,1,32], index: 19, kind: output, shape index: {}]  }
   0x1   :  { %3209 = sst [smem:[#allocation19_spill]] %s3173_s0 }
   0x2   :  { %3210 = sst [smem:[#allocation20_spill]] %s3174_s1 }
   0x3   :  { %3211 = sst [smem:[#allocation21_spill]] %s3175_s2 }
   0x4   :  { %3212 = sst [smem:[#allocation22_spill]] %s3176_s3 }
   0x5   :  { %3213 = sst [smem:[#allocation23_spill]] %s3177_s4 }
   0x6   :  { %3214 = sst [smem:[#allocation24_spill]] %s3178_s5 }
   0x7   :  { %3215 = sst [smem:[#allocation25_spill]] %s3180_s7 }
   0x8   :  { %3216 = sst [smem:[#allocation26_spill]] %s3190_s17 }
   0x9   :  { %3217 = sst [smem:[#allocation27_spill]] %s3191_s18 }
   0xa   :  { %3218 = sst [smem:[#allocation28_spill]] %s3192_s19 }
   0xb   :  { %24 = vsyncpa [#allocation4], 0 }
   0xc   :  { %26 = vsyncpa [#allocation4 + $0x1], 0  ;;  %s2747_s0 = smov 0   ;;  %s2749_s30 = smov 0  }
   0xd   :  { %s2751_s20 = smov 0   ;;  %s2753_s21 = smov 0  }
   0xe   :  { %s2755_s1 = smov 0   ;;  %s2757_s22 = smov 0  }
   0xf   :  { %s2759_s2 = smov 0   ;;  %s2761_s23 = smov 0  }
  0x10 LB: > { %3219 = sst [smem:[#allocation6_spill]] %s2609_s0  ;;  %s2192_s24 = sadd.s32 4294967295, %s2637_s23   ;;  %s2637_s23 = sphi %s2761_s23, %s32_s23   ;;  %s2633_s2 = sphi %s2759_s2, %s3272_s2   ;;  %s2629_s22 = sphi %s2757_s22, %s3268_s22   ;;  %s2625_s1 = sphi %s2755_s1, %s3267_s1   ;;  %s2621_s21 = sphi %s2753_s21, %s3266_s21   ;;  %s2617_s20 = sphi %s2751_s20, %s3265_s20   ;;  %s2613_s30 = sphi %s2749_s30, %s3271_s30   ;;  %s2609_s0 = sphi %s2747_s0, %s3270_s0  }
  0x11   : > { %3220 = sst [smem:[#allocation7_spill]] %s2617_s20  ;;  %s2193_s25 = sadd.s32 4294967294, %s2637_s23  }
  0x12   : > { %3221 = sst [smem:[#allocation8_spill]] %s2621_s21  ;;  %s41_s3 = sadd.s32 1, %s2629_s22 }
  0x13   : > { %3222 = sst [smem:[#allocation9_spill]] %s2625_s1  ;;  %p42_p0 = scmp.ge.s32.totalorder %s41_s3, 2 }
  0x14   : > { %3223 = sst [smem:[#allocation10_spill]] %s2629_s22  ;;  %s44_s26 = sadd.s32 1, %s2633_s2 }
  0x15   : > { %3224 = sst [smem:[#allocation11_spill]] %s2633_s2  ;;  %p535_p1 = scmp.ne.s32.totalorder %s2617_s20, %s2613_s30 }
  0x16   : > { %3225 = sst [smem:[#allocation12_spill]] %s2637_s23  ;;  %p536_p2 = scmp.eq.s32.totalorder %s2192_s24, 3 }
  0x17   : > { %s3274_s3 = smov (%p42_p0, %s41_s3), 0  ;;  %s3276_s26 = smov (!%p42_p0, %s44_s26), %s2633_s2 }
  0x18   : > { %3226 = sst [smem:[#allocation13_spill]] %s3274_s3  ;;  %p2796_p3 = por %p536_p2, %p535_p1 }
  0x19   : > { %p541_p4 = scmp.ne.s32.totalorder %s2613_s30, %s2609_s0  ;;  %p46_p5 = scmp.ge.s32.totalorder %s3276_s26, 2 }
  0x1a   : > { %s3227_s27 = scalar_select %p2796_p3, 1, 0 }
  0x1b   : > { %p542_p6 = scmp.eq.s32.totalorder %s2193_s25, 3  ;;  %p2196_p7 = scmp.ge.s32.totalorder %s2637_s23, 1 }
  0x1c   : > { %3228 = sst [smem:[#allocation14_spill]] %s3227_s27  ;;  %p672_p8 = scmp.lt.s32.totalorder %s2637_s23, 5 }
  0x1d   : > { %s3278_s26 = smov (%p46_p5, %s3276_s26), 0  ;;  %p2806_p9 = por %p542_p6, %p541_p4 }
  0x1e   : > { %3229 = sst [smem:[#allocation15_spill]] %s3278_s26  ;;  %p673_p10 = pnand %p2196_p7, %p672_p8 }
  0x1f   : > { %s3230_s28 = scalar_select %p2806_p9, 1, 0 }
  0x20   : > { %s522_s29 = ssub.s32 %s2633_s2, %s3278_s26  ;;  %s525_s24 = sadd.s32 1, %s2617_s20 }
  0x21   : > { %3231 = sst [smem:[#allocation16_spill]] %s3230_s28  ;;  %p523_p11 = scmp.eq.s32.totalorder %s522_s29, 0 }
  0x22   : > { %676 = sbr.rel (%p673_p10) target bundleno = 3955 (0xf73), region = 96 }
  0x23   : > { %s2814_s3 = scalar_select %p523_p11, %s2617_s20, %s525_s24  }
  0x25   : > { %3232 = sst [smem:[#allocation17_spill]] %s2814_s3 }
  0x29   : > { %p777_p12 = scmp.lt.s32.totalorder %s2625_s1, 1  ;;  %p782_p13 = scmp.lt.s32.totalorder %s2621_s21, 1 }
  0x2a   : > { %s3233_s2 = sld [smem:[#allocation19_spill]]  ;;  %s3237_s5 = sld [smem:[#allocation24_spill]] }
  0x2b   : > { %s778_s22 = scalar_select %p777_p12, %s2625_s1, 1 }
  0x2c   : > { %s2821_s0 = scalar_select %p782_p13, %s2621_s21, 1 }
  0x2d   : > { %s2255_s29 = sshll.u32 %s778_s22, 4  ;;  %s3238_s7 = sld [smem:[#allocation25_spill]] }
  0x2e   : > { %s2256_s18 = sshll.u32 %s2821_s0, 4  ;;  %s2259_s19 = sshll.u32 %s2821_s0, 5 }
  0x2f   : > { %s2880_s23 = scalar_lea.vmem %s3187_s14, %s2259_s19  ;;  %s828_s4 = scalar_lea.vmem %s3188_s15, %s2821_s0 }
  0x30   : > { %s2826_s25 = scalar_lea.vmem %s3233_s2, %s2255_s29  ;;  %s2840_s22 = scalar_lea.vmem %s3237_s5, %s2256_s18 }
  0x31   : > { %3234 = sst [smem:[#allocation18_spill]] %s2826_s25  ;;  %s2870_s29 = scalar_lea.vmem %s3185_s12, %s2256_s18 }
  0x32   : > { %s831_s2 = scalar_lea.vmem %s3189_s16, %s2821_s0  ;;  %s3240_s5 = sld [smem:[#allocation8_spill]] }
  0x33   : > { %s2849_s20 = scalar_lea.vmem %s3238_s7, %s2256_s18  ;;  %s3239_s18 = sand.u32 1, %s2613_s30  }
  0x34   : > { %s2892_s25 = scalar_lea.vmem [#allocation3], %s3239_s18 }
  0x38   : > { %p2207_p0 = scmp.ne.s32.totalorder %s3240_s5, 0 }
  0x39   : > { %s3241_s28 = sld [smem:[#allocation20_spill]] (!%p2207_p0)  ;;  %s3242_s1 = sld [smem:[#allocation18_spill]] (!%p2207_p0)  ;;  %vm879_vm0 = vcmask (!%p2207_p0), 392192   ;;  %vm935_vm1 = vcmask (!%p2207_p0), 261120  }
  0x3a   : > { %836 = sbr.rel (%p2207_p0) target bundleno = 294 (0x126), region = 100  ;;  %s3243_s26 = sld [smem:[#allocation21_spill]] (!%p2207_p0) }
  0x3f   : > { %v2450_v0 = vld [vmem:[%s3241_s28] sm:$0xff] (!%p2207_p0)   ;;  %v2451_v1 = vld [vmem:[%s3241_s28 + $0x8] sm:$0xff] (!%p2207_p0)   ;;  %v2452_v3 = vld [vmem:[%s3241_s28 + $0x10] sm:$0xff] (!%p2207_p0)  }
  0x40   : > { %2297 = vmatprep.subr.bf16.mxu0 (!%p2207_p0), %v2450_v0  ;;  %v2453_v2 = vld [vmem:[%s3242_s1] sm:$0xff] (!%p2207_p0)   ;;  %v2454_v4 = vld [vmem:[%s3242_s1 + $0x8] sm:$0xff] (!%p2207_p0)   ;;  %v849_v5 = vld [vmem:[%s3243_s26 + $0x10] sm:$0xff] (!%p2207_p0) }
  0x41   : > { %2298 = vmatpush3.bf16.msra.mxu0 %v2450_v0  ;;  %2303 = vmatprep.mubr.msk.bf16.mxu0 %vm879_vm0, %v2453_v2  ;;  %v847_v6 = vld [vmem:[%s3243_s26] sm:$0xff]  ;;  %v850_v8 = vld [vmem:[%s3243_s26 + $0x18] sm:$0xff]  ;;  %v848_v11 = vld [vmem:[%s3243_s26 + $0x8] sm:$0xff] }
  0x42   : > { %2299 = vmatprep.subr.bf16.mxu0 %v2451_v1 }
  0x45   : > { %2300 = vmatpush3.bf16.msra.mxu0 %v2451_v1 }
  0x46   : > { %2301 = vmatprep.subr.bf16.mxu0 %v2452_v3 }
  0x49   : > { %2302 = vmatpush3.bf16.msra.mxu0 %v2452_v3 }
  0x4c   : > { %2304 = vmatmul.mubr.msk.bf16.vlgmr.msra.gmra.mrb[0].mxu0 %vm879_vm0, %v2454_v4 }
 0x11f   : > { %v2305_v7 = vpop.f32.mrb[0].mxu0 }
 0x120   : > { %v929_v9 = vadd.f32 %v2305_v7, %v849_v5  ;;  %v920_v10 = vpop.f32.mrb[1].mxu0 }
 0x121   : > { %v921_v12 = vadd.f32 %v920_v10, %v847_v6  ;;  %v2306_v13 = vpop.f32.mrb[2].mxu0 }
 0x122   : > { %938 = vst.msk [vmem:[#allocation2 + $0x10] sm:$0xff] %vm935_vm1, %v929_v9  ;;  %v932_v14 = vadd.f32 %v2306_v13, %v850_v8  ;;  %v923_v15 = vpop.f32.mrb[3].mxu0 }
 0x123   : > { %936 = vst.msk [vmem:[#allocation2] sm:$0xff] %vm935_vm1, %v921_v12  ;;  %v924_v16 = vadd.f32 %v923_v15, %v848_v11 }
 0x124   : > { %939 = vst.msk [vmem:[#allocation2 + $0x18] sm:$0xff] %vm935_vm1, %v932_v14 }
 0x125   : > { %937 = vst.msk [vmem:[#allocation2 + $0x8] sm:$0xff] %vm935_vm1, %v924_v16 }
 0x126 PF: > { %vm950_vm2 = vcmask 261120   ;;  %v2475_v45 = vld [vmem:[%s2840_s22] sm:$0xff]   ;;  %v2476_v46 = vld [vmem:[%s2840_s22 + $0x8] sm:$0xff]   ;;  %s3244_s17 = sld [smem:[#allocation22_spill]]  ;;  %s3246_s7 = sld [smem:[#allocation23_spill]]  ;;  %vm1155_vm3 = vcmask 130048  }
 0x127   : > { %2307 = vmatprep.subr.bf16.mxu0 %v2475_v45  ;;  %s3248_s1 = scalar_lea.vmem %s3179_s6, %s2821_s0  ;;  %s2639_s22 = smov 96   ;;  %vm1877_vm5 = vcmask 523264  }
 0x128   : > { %2308 = vmatpush3.bf16.msra.mxu0 %v2475_v45  ;;  %v2217_v15 = vld [vmem:[%s3248_s1] ss:$0 sm:$0xff]  ;;  %s2641_s24 = smov 64   ;;  %s2644_s21 = smov 48  }
 0x129   : > { %v2920_v18 = vld [vmem:[#allocation2 + $0x10] sm:$0xff]  ;;  %2309 = vmatprep.subr.bf16.mxu0 %v2476_v46  ;;  %s2645_s18 = smov 16   ;;  %s3250_s1 = scalar_lea.vmem %s3182_s9, %s2821_s0 }
 0x12a   : > { %v2918_v17 = vld [vmem:[#allocation2] sm:$0xff]  ;;  %v957_v21 = vsel %vm950_vm2, %v2920_v18, 0.0 }
 0x12b   : > { %v951_v20 = vsel %vm950_vm2, %v2918_v17, 0.0  ;;  %v2928_v22 = vld [vmem:[#allocation2 + $0x18] sm:$0xff]  ;;  %958 = vadd.xlane.f32.xlu1 %v957_v21 }
 0x12c   : > { %v2922_v19 = vld [vmem:[#allocation2 + $0x8] sm:$0xff]  ;;  %952 = vadd.xlane.f32.xlu0 %v951_v20  ;;  %v960_v24 = vsel %vm950_vm2, %v2928_v22, 0.0  ;;  %2310 = vmatpush3.bf16.msra.mxu0 %v2476_v46  ;;  %s3245_s5 = scalar_lea.vmem %s3244_s17, %s2821_s0  ;;  %s3247_s3 = scalar_lea.vmem %s3246_s7, %s2821_s0 }
 0x12d   : > { %v954_v23 = vsel %vm950_vm2, %v2922_v19, 0.0  ;;  %v2215_v61 = vld [vmem:[%s3245_s5] ss:$0 sm:$0xff]  ;;  %s2642_s17 = smov 80   ;;  %s2643_s5 = smov 112  }
 0x12e   : > { %v2216_v3 = vld [vmem:[%s3247_s3] ss:$0 sm:$0xff]  ;;  %s3249_s3 = scalar_lea.vmem %s3181_s8, %s2821_s0  ;;  %s3253_s7 = scalar_lea.vmem %s3186_s13, %s2821_s0 }
 0x12f   : > { %961 = vadd.xlane.f32.xlu1 %v960_v24 }
 0x130   : > { %955 = vadd.xlane.f32.xlu0 %v954_v23 }
 0x1b8   : > { %v959_v26 = vpop.xlane.xlu1 %958 }
 0x1b9   : > { %v953_v25 = vpop.xlane.xlu0 %952  ;;  %v966_v28 = vmul.f32 0.03125, %v959_v26 }
 0x1ba   : > { %v964_v27 = vmul.f32 0.03125, %v953_v25 }
 0x1bb   : > { %v970_v30 = vsub.f32 %v2920_v18, %v966_v28 }
 0x1bc   : > { %v968_v29 = vsub.f32 %v2918_v17, %v964_v27  ;;  %v962_v32 = vpop.xlane.xlu1 %961 }
 0x1bd   : > { %v956_v31 = vpop.xlane.xlu0 %955  ;;  %v967_v34 = vmul.f32 0.03125, %v962_v32  ;;  %v974_v36 = vmul.f32 %v970_v30, %v970_v30 }
 0x1be   : > { %v965_v33 = vmul.f32 0.03125, %v956_v31  ;;  %v972_v35 = vmul.f32 %v968_v29, %v968_v29 }
 0x1bf   : > { %v971_v38 = vsub.f32 %v2928_v22, %v967_v34  ;;  %v982_v40 = vsel %vm950_vm2, %v974_v36, 0.0 }
 0x1c0   : > { %v969_v37 = vsub.f32 %v2922_v19, %v965_v33  ;;  %v976_v39 = vsel %vm950_vm2, %v972_v35, 0.0 }
 0x1c1   : > { %977 = vadd.xlane.f32.xlu0 %v976_v39  ;;  %v975_v42 = vmul.f32 %v971_v38, %v971_v38  ;;  %v944_v39 = vlaneseq }
 0x1c2   : > { %v973_v41 = vmul.f32 %v969_v37, %v969_v37 }
 0x1c3   : > { %v985_v44 = vsel %vm950_vm2, %v975_v42, 0.0 }
 0x1c4   : > { %v979_v43 = vsel %vm950_vm2, %v973_v41, 0.0  ;;  %v2640_v41 = vmov -1e+30  }
 0x1c5   : > { %983 = vadd.xlane.f32.xlu0 %v982_v40  ;;  %980 = vadd.xlane.f32.xlu1 %v979_v43  ;;  %v945_v40 = vand.u32 127, %v944_v39 }
 0x1c7   : > { %vm946_vm4 = vcmp.lt.s32.totalorder %v945_v40, 17 }
 0x1c8   : > { %v2969_v42 = vsel %vm946_vm4, 0.0, %v2640_v41 }
 0x1c9   : > { %986 = vadd.xlane.f32.xlu1 %v985_v44 }
 0x24e   : > { %v978_v47 = vpop.xlane.xlu0 %977 }
 0x24f   : > { %v988_v48 = vmul.f32 0.03125, %v978_v47 }
 0x251   : > { %v992_v49 = vadd.f32 1e-06, %v988_v48 }
 0x252   : > { %v981_v50 = vpop.xlane.xlu1 %980  ;;  %v984_v51 = vpop.xlane.xlu0 %983 }
 0x253   : > { %2485 = vrsqrt.f32 %v992_v49  ;;  %v989_v52 = vmul.f32 0.03125, %v981_v50  ;;  %v990_v53 = vmul.f32 0.03125, %v984_v51 }
 0x255   : > { %v993_v54 = vadd.f32 1e-06, %v989_v52  ;;  %v994_v55 = vadd.f32 1e-06, %v990_v53 }
 0x256   : > { %v987_v56 = vpop.xlane.xlu1 %986 }
 0x257   : > { %2487 = vrsqrt.f32 %v993_v54  ;;  %v991_v57 = vmul.f32 0.03125, %v987_v56 }
 0x258   : > { %2489 = vrsqrt.f32 %v994_v55 }
 0x259   : > { %v995_v58 = vadd.f32 1e-06, %v991_v57 }
 0x25b   : > { %2491 = vrsqrt.f32 %v995_v58 }
 0x25d   : > { %v2486_v59 = vpop.eup %2485 }
 0x25e   : > { %v1000_v60 = vmul.f32 %v2486_v59, %v968_v29 }
 0x260   : > { %v1010_v1 = vmul.f32 %v2215_v61, %v1000_v60 }
 0x261   : > { %v2488_v62 = vpop.eup %2487 }
 0x262   : > { %v2490_v63 = vpop.eup %2489  ;;  %v1001_v0 = vmul.f32 %v2488_v62, %v969_v37  ;;  %v1020_v7 = vadd.f32 %v2216_v3, %v1010_v1 }
 0x263   : > { %v1002_v2 = vmul.f32 %v2490_v63, %v970_v30 }
 0x264   : > { %v1011_v4 = vmul.f32 %v2215_v61, %v1001_v0 }
 0x265   : > { %v2492_v5 = vpop.eup %2491  ;;  %v1012_v9 = vmul.f32 %v2215_v61, %v1002_v2 }
 0x266   : > { %v1003_v6 = vmul.f32 %v2492_v5, %v971_v38  ;;  %v1021_v8 = vadd.f32 %v2216_v3, %v1011_v4 }
 0x267   : > { %v1022_v12 = vadd.f32 %v2216_v3, %v1012_v9 }
 0x268   : > { %v1024_v10 = vpack.c.bf16 %v1021_v8, %v1020_v7  ;;  %v1013_v11 = vmul.f32 %v2215_v61, %v1003_v6 }
 0x26a   : > { %2311 = vmatprep.mubr.msk.bf16.mxu0 %vm950_vm2, %v1024_v10  ;;  %v1023_v13 = vadd.f32 %v2216_v3, %v1013_v11 }
 0x26c   : > { %v1025_v14 = vpack.c.bf16 %v1023_v13, %v1022_v12 }
 0x26e   : > { %2312 = vmatmul.mubr.msk.bf16.vlgmr.msra.gmra.mrb[0].mxu0 %vm950_vm2, %v1025_v14 }
 0x341   : > { %v2313_v16 = vpop.f32.mrb[0].mxu0 }
 0x342   : > { %v1098_v20 = vadd.f32 %v2313_v16, %v2217_v15  ;;  %v1089_v21 = vpop.f32.mrb[1].mxu0 }
 0x343   : > { %v1090_v23 = vadd.f32 %v2217_v15, %v1089_v21  ;;  %v2314_v24 = vpop.f32.mrb[2].mxu0 }
 0x344   : > { %v1101_v25 = vadd.f32 %v2314_v24, %v2217_v15  ;;  %1114 = vrot.lane.b32.xlu1 %v1098_v20, %s2639_s22  ;;  %v1092_v26 = vpop.f32.mrb[3].mxu0 }
 0x345   : > { %v1093_v27 = vadd.f32 %v2217_v15, %v1092_v26  ;;  %1110 = vrot.lane.b32.xlu0 %v1090_v23, %s2639_s22 }
 0x346   : > { %v2961_v28 = vpack.c.bf16 %v1101_v25, %v1098_v20  ;;  %v2460_v29 = vpack.i.bf16 %v1101_v25, %v1098_v20 }
 0x347   : > { %v2963_v30 = vpack.c.bf16 %v1093_v27, %v1090_v23  ;;  %v2455_v31 = vpack.i.bf16 %v1093_v27, %v1090_v23 }
 0x348   : > { %1112 = vrot.lane.b32.xlu1 %v1093_v27, %s2639_s22 }
 0x349   : > { %2317 = vmatprep.mubr.msk.bf16.mxu1 %vm1155_vm3, %v2963_v30 }
 0x34c   : > { %1116 = vrot.lane.b32.xlu1 %v1101_v25, %s2639_s22 }
 0x3b6   : > { %v1115_v32 = vpop.permute.xlu1 %1114 }
 0x3b7   : > { %v1111_v33 = vpop.permute.xlu0 %1110 }
 0x3b8   : > { %1122 = vxpose.xlu0.b32.start [1/4] (short) (narrow) %v1111_v33, 16 }
 0x3ba   : > { %v1113_v34 = vpop.permute.xlu1 %1112 }
 0x3bc   : > { %1123 = vxpose.xlu0.b32.cont [2/4] (short) (narrow) %v1113_v34, 16 }
 0x3be   : > { %v1117_v35 = vpop.permute.xlu1 %1116 }
 0x3c0   : > { %1124 = vxpose.xlu0.b32.cont [3/4] (short) (narrow) %v1115_v32, 16 }
 0x3c4   : > { %1125 = vxpose.xlu0.b32.end [4/4] (short) (narrow) %v1117_v35, 16 }
 0x438   : > { %v1138_v36 = vpop.trf.xlu0 }
 0x43c   : > { %v1139_v37 = vpop.trf.xlu0 }
 0x43d   : > { %v1154_v38 = vpack.c.bf16 %v1139_v37, %v1138_v36 }
 0x43f   : > { %2315 = vmatprep.subr.bf16.mxu1 %v1154_v38 }
 0x440   : > { %2316 = vmatpush3.bf16.msra.mxu1 %v1154_v38 }
 0x443   : > { %2318 = vmatmul.mubr.msk.bf16.vlgmr.msra.gmra.mrb[0].mxu1 %vm1155_vm3, %v2961_v28 }
 0x516   : > { %v2319_v43 = vpop.f32.mrb[0].mxu1 }
 0x517   : > { %v1205_v44 = vadd.f32 %v2319_v43, %v2969_v42  ;;  %v1196_v45 = vpop.f32.mrb[1].mxu1 }
 0x518   : > { %v1197_v46 = vadd.f32 %v1196_v45, %v2969_v42  ;;  %v2320_v47 = vpop.f32.mrb[2].mxu1 }
 0x519   : > { %v1199_v48 = vpop.f32.mrb[3].mxu1  ;;  %v1217_v49 = vsel %vm950_vm2, %v1205_v44, -inf  ;;  %v1208_v52 = vadd.f32 %v2320_v47, %v2969_v42 }
 0x51a   : > { %v1200_v50 = vadd.f32 %v1199_v48, %v2969_v42  ;;  %1218 = vmax.xlane.f32.xlu0 %v1217_v49  ;;  %v1211_v51 = vsel %vm950_vm2, %v1197_v46, -inf }
 0x51b   : > { %1212 = vmax.xlane.f32.xlu1 %v1211_v51  ;;  %v1220_v54 = vsel %vm950_vm2, %v1208_v52, -inf }
 0x51c   : > { %v1214_v53 = vsel %vm950_vm2, %v1200_v50, -inf }
 0x51f   : > { %1215 = vmax.xlane.f32.xlu1 %v1214_v53 }
 0x523   : > { %1221 = vmax.xlane.f32.xlu1 %v1220_v54 }
 0x530   : > { %1259 = vrot.lane.b32.xlu0 %v2963_v30, %s2641_s24 }
 0x534   : > { %2456 = vrot.lane.b32.xlu1 %v2455_v31, %s2642_s17 }
 0x538   : > { %2461 = vrot.lane.b32.xlu1 %v2460_v29, %s2642_s17 }
 0x5a7   : > { %v1219_v55 = vpop.xlane.xlu0 %1218 }
 0x5a8   : > { %v1225_v56 = vsub.f32 %v1205_v44, %v1219_v55  ;;  %v1213_v57 = vpop.xlane.xlu1 %1212 }
 0x5a9   : > { %v1223_v58 = vsub.f32 %v1197_v46, %v1213_v57 }
 0x5aa   : > { %v1231_v59 = vmul.f32 1.442695, %v1225_v56 }
 0x5ab   : > { %v1227_v60 = vmul.f32 1.442695, %v1223_v58  ;;  %v1260_v61 = vpop.permute.xlu0 %1259 }
 0x5ac   : > { %2493 = vpow2.f32 %v1231_v59  ;;  %2321 = vmatprep.subr.bf16.mxu1 %v1260_v61  ;;  %v1216_v2 = vpop.xlane.xlu1 %1215 }
 0x5ad   : > { %2495 = vpow2.f32 %v1227_v60  ;;  %2322 = vmatpush3.bf16.msra.mxu1 %v1260_v61  ;;  %v1224_v5 = vsub.f32 %v1200_v50, %v1216_v2 }
 0x5af   : > { %v1229_v7 = vmul.f32 1.442695, %v1224_v5 }
 0x5b0   : > { %v1222_v3 = vpop.xlane.xlu1 %1221 }
 0x5b1   : > { %v1226_v4 = vsub.f32 %v1208_v52, %v1222_v3 }
 0x5b3   : > { %v1233_v6 = vmul.f32 1.442695, %v1226_v4 }
 0x5b4   : > { %v2457_v12 = vpop.permute.xlu1 %2456 }
 0x5b5   : > { %2497 = vpow2.f32 %v1233_v6  ;;  %v2458_v13 = vunpack.i.l.bf16 %v2457_v12  ;;  %v2459_v14 = vunpack.i.h.bf16 %v2457_v12 }
 0x5b6   : > { %v2494_v62 = vpop.eup %2493  ;;  %2499 = vpow2.f32 %v1229_v7 }
 0x5b7   : > { %v2496_v63 = vpop.eup %2495  ;;  %v1241_v0 = vsel %vm950_vm2, %v2494_v62, 0.0 }
 0x5b8   : > { %1242 = vadd.xlane.f32.xlu0 %v1241_v0  ;;  %v1235_v1 = vsel %vm950_vm2, %v2496_v63, 0.0  ;;  %v2462_v15 = vpop.permute.xlu1 %2461 }
 0x5b9   : > { %1236 = vadd.xlane.f32.xlu1 %v1235_v1  ;;  %v2463_v16 = vunpack.i.l.bf16 %v2462_v15  ;;  %v2464_v20 = vunpack.i.h.bf16 %v2462_v15 }
 0x5bf   : > { %v2498_v8 = vpop.eup %2497 }
 0x5c0   : > { %v1244_v9 = vsel %vm950_vm2, %v2498_v8, 0.0  ;;  %v2500_v10 = vpop.eup %2499 }
 0x5c1   : > { %v1238_v11 = vsel %vm950_vm2, %v2500_v10, 0.0 }
 0x5ca   : > { %1261 = vrot.lane.b32.xlu1 %v2961_v28, %s2641_s24  ;;  %s3251_s24 = scalar_lea.vmem %s3183_s10, %s2821_s0 }
 0x5ce   : > { %1365 = vrot.lane.b32.xlu0 %v2963_v30, %s2643_s5  ;;  %1367 = vrot.lane.b32.xlu1 %v2961_v28, %s2643_s5 }
 0x5ed   : > { %1245 = vadd.xlane.f32.xlu0 %v1244_v9 }
 0x5f1   : > { %1239 = vadd.xlane.f32.xlu0 %v1238_v11 }
 0x61e   : > { %1332 = vxpose.xlu0.b32.start [1/4] (short) (narrow) %v2458_v13, 16 }
 0x622   : > { %1333 = vxpose.xlu0.b32.cont [2/4] (short) (narrow) %v2459_v14, 16 }
 0x626   : > { %1334 = vxpose.xlu0.b32.cont [3/4] (short) (narrow) %v2463_v16, 16 }
 0x62a   : > { %1335 = vxpose.xlu0.b32.end [4/4] (short) (narrow) %v2464_v20, 16 }
 0x645   : > { %v1243_v24 = vpop.xlane.xlu0 %1242 }
 0x646   : > { %v1237_v21 = vpop.xlane.xlu1 %1236 }
 0x649   : > { %v1366_v25 = vpop.permute.xlu0 %1365 }
 0x64a   : > { %v1262_v23 = vpop.permute.xlu1 %1261 }
 0x64b   : > { %2323 = vmatprep.subr.bf16.mxu1 %v1262_v23 }
 0x64c   : > { %2324 = vmatpush3.bf16.msra.mxu1 %v1262_v23 }
 0x64e   : > { %v1368_v44 = vpop.permute.xlu1 %1367 }
 0x67a   : > { %v1246_v26 = vpop.xlane.xlu0 %1245 }
 0x67b   : > { %2501 = vrcp.f32 %v1246_v26 }
 0x67c   : > { %2503 = vrcp.f32 %v1237_v21 }
 0x67d   : > { %2505 = vrcp.f32 %v1243_v24 }
 0x67e   : > { %v1240_v27 = vpop.xlane.xlu0 %1239 }
 0x67f   : > { %2507 = vrcp.f32 %v1240_v27 }
 0x685   : > { %v2502_v29 = vpop.eup %2501 }
 0x686   : > { %v2504_v31 = vpop.eup %2503  ;;  %v1254_v34 = vmul.f32 %v2502_v29, %v2498_v8 }
 0x687   : > { %v2506_v32 = vpop.eup %2505  ;;  %v1251_v35 = vmul.f32 %v2504_v31, %v2496_v63 }
 0x688   : > { %v1253_v37 = vmul.f32 %v2506_v32, %v2494_v62 }
 0x689   : > { %v2508_v33 = vpop.eup %2507 }
 0x68a   : > { %v1252_v36 = vmul.f32 %v2508_v33, %v2500_v10  ;;  %v1256_v39 = vpack.c.bf16 %v1254_v34, %v1253_v37  ;;  %v2478_v37 = vld [vmem:[%s2849_s20 + $0x8] sm:$0xff]  }
 0x68c   : > { %v1255_v38 = vpack.c.bf16 %v1252_v36, %v1251_v35  ;;  %v2477_v36 = vld [vmem:[%s2849_s20] sm:$0xff]  }
 0x68d   : > { %2343 = vmatprep.subr.bf16.mxu0 %v2477_v36 }
 0x68e   : > { %2325 = vmatprep.mubr.msk.bf16.mxu1 %vm950_vm2, %v1255_v38  ;;  %2344 = vmatpush3.bf16.msra.mxu0 %v2477_v36 }
 0x68f   : > { %2326 = vmatmul.mubr.msk.bf16.vlgmr.msra.gmra.mrb[4].mxu1 %vm950_vm2, %v1256_v39  ;;  %2345 = vmatprep.subr.bf16.mxu0 %v2478_v37 }
 0x690   : > { %2331 = vmatprep.mubr.msk.bf16.mxu1 %vm1155_vm3, %v1366_v25 }
 0x692   : > { %2346 = vmatpush3.bf16.msra.mxu0 %v2478_v37 }
 0x69e   : > { %v1348_v40 = vpop.trf.xlu0 }
 0x6a2   : > { %v1349_v41 = vpop.trf.xlu0 }
 0x6a3   : > { %v1364_v43 = vpack.c.bf16 %v1349_v41, %v1348_v40 }
 0x6a5   : > { %2329 = vmatprep.subr.bf16.mxu1 %v1364_v43 }
 0x6a6   : > { %2330 = vmatpush3.bf16.msra.mxu1 %v1364_v43 }
 0x6a9   : > { %2332 = vmatmul.mubr.msk.bf16.vlgmr.msra.gmra.mrb[8].mxu1 %vm1155_vm3, %v1368_v44 }
 0x762   : > { %v2991_v45 = vpop.f32.mrb[4].mxu1 }
 0x763   : > { %v2993_v46 = vpop.f32.mrb[5].mxu1 }
 0x764   : > { %v2995_v47 = vpop.f32.mrb[6].mxu1 }
 0x765   : > { %v2997_v48 = vpop.f32.mrb[7].mxu1 }
 0x77c   : > { %v2333_v49 = vpop.f32.mrb[8].mxu1 }
 0x77d   : > { %v1409_v50 = vpop.f32.mrb[9].mxu1  ;;  %v1418_v58 = vadd.f32 %v2333_v49, %v2969_v42 }
 0x77e   : > { %v1410_v51 = vadd.f32 %v1409_v50, %v2969_v42  ;;  %v2334_v52 = vpop.f32.mrb[10].mxu1 }
 0x77f   : > { %v1421_v53 = vadd.f32 %v2334_v52, %v2969_v42  ;;  %v1412_v54 = vpop.f32.mrb[11].mxu1  ;;  %v1430_v60 = vsel %vm950_vm2, %v1418_v58, -inf }
 0x780   : > { %v1413_v55 = vadd.f32 %v1412_v54, %v2969_v42  ;;  %v1424_v56 = vsel %vm950_vm2, %v1410_v51, -inf }
 0x781   : > { %1425 = vmax.xlane.f32.xlu1 %v1424_v56  ;;  %v1433_v57 = vsel %vm950_vm2, %v1421_v53, -inf }
 0x782   : > { %1434 = vmax.xlane.f32.xlu0 %v1433_v57  ;;  %v1427_v59 = vsel %vm950_vm2, %v1413_v55, -inf }
 0x785   : > { %1428 = vmax.xlane.f32.xlu1 %v1427_v59 }
 0x789   : > { %1431 = vmax.xlane.f32.xlu1 %v1430_v60 }
 0x79a   : > { %1470 = vrot.lane.b32.xlu1 %v2963_v30, %s2644_s21 }
 0x80e   : > { %v1426_v61 = vpop.xlane.xlu1 %1425 }
 0x80f   : > { %v1436_v63 = vsub.f32 %v1410_v51, %v1426_v61  ;;  %v1435_v0 = vpop.xlane.xlu0 %1434 }
 0x810   : > { %v1439_v4 = vsub.f32 %v1421_v53, %v1435_v0 }
 0x811   : > { %v1440_v3 = vmul.f32 1.442695, %v1436_v63 }
 0x812   : > { %v1429_v62 = vpop.xlane.xlu1 %1428  ;;  %v1446_v6 = vmul.f32 1.442695, %v1439_v4 }
 0x813   : > { %v1437_v7 = vsub.f32 %v1413_v55, %v1429_v62  ;;  %v2235_v62 = vld [vmem:[%s3250_s1] ss:$0 sm:$0xff] }
 0x815   : > { %v1442_v8 = vmul.f32 1.442695, %v1437_v7 }
 0x816   : > { %v1432_v1 = vpop.xlane.xlu1 %1431 }
 0x817   : > { %v1438_v2 = vsub.f32 %v1418_v58, %v1432_v1 }
 0x819   : > { %v1444_v5 = vmul.f32 1.442695, %v1438_v2 }
 0x81a   : > { %v1471_v42 = vpop.permute.xlu1 %1470 }
 0x81b   : > { %2509 = vpow2.f32 %v1444_v5  ;;  %2335 = vmatprep.subr.bf16.mxu1 %v1471_v42 }
 0x81c   : > { %2336 = vmatpush3.bf16.msra.mxu1 %v1471_v42  ;;  %2511 = vpow2.f32 %v1440_v3 }
 0x81d   : > { %2513 = vpow2.f32 %v1446_v6 }
 0x81e   : > { %2515 = vpow2.f32 %v1442_v8 }
 0x825   : > { %v2510_v9 = vpop.eup %2509 }
 0x826   : > { %v1454_v30 = vsel %vm950_vm2, %v2510_v9, 0.0  ;;  %v2512_v10 = vpop.eup %2511 }
 0x827   : > { %1455 = vadd.xlane.f32.xlu1 %v1454_v30  ;;  %v1448_v11 = vsel %vm950_vm2, %v2512_v10, 0.0  ;;  %v2514_v12 = vpop.eup %2513 }
 0x828   : > { %v1457_v13 = vsel %vm950_vm2, %v2514_v12, 0.0  ;;  %v2516_v14 = vpop.eup %2515 }
 0x829   : > { %v1451_v15 = vsel %vm950_vm2, %v2516_v14, 0.0 }
 0x82b   : > { %1449 = vadd.xlane.f32.xlu1 %v1448_v11 }
 0x82f   : > { %1458 = vadd.xlane.f32.xlu1 %v1457_v13 }
 0x833   : > { %1452 = vadd.xlane.f32.xlu1 %v1451_v15 }
 0x844   : > { %1472 = vrot.lane.b32.xlu1 %v2961_v28, %s2644_s21  ;;  %s3252_s21 = scalar_lea.vmem %s3184_s11, %s2821_s0  ;;  %s3254_s0 = sld [smem:[#allocation8_spill]] }
 0x84a   : > { %p2251_p1 = scmp.ne.s32.totalorder %s3254_s0, 1 }
 0x84b   : > { %vm1958_vm6 = vcmask (!%p2251_p1), 253952   ;;  %s3255_s1 = sld [smem:[#allocation26_spill]] (!%p2251_p1) }
 0x8b4   : > { %v1456_v16 = vpop.xlane.xlu1 %1455 }
 0x8b8   : > { %v1450_v20 = vpop.xlane.xlu1 %1449 }
 0x8bc   : > { %v1459_v21 = vpop.xlane.xlu1 %1458 }
 0x8bd   : > { %2517 = vrcp.f32 %v1459_v21 }
 0x8be   : > { %2519 = vrcp.f32 %v1450_v20 }
 0x8bf   : > { %2521 = vrcp.f32 %v1456_v16 }
 0x8c0   : > { %v1453_v23 = vpop.xlane.xlu1 %1452 }
 0x8c1   : > { %2523 = vrcp.f32 %v1453_v23 }
 0x8c4   : > { %v1473_v24 = vpop.permute.xlu1 %1472 }
 0x8c5   : > { %2337 = vmatprep.subr.bf16.mxu1 %v1473_v24 }
 0x8c6   : > { %2338 = vmatpush3.bf16.msra.mxu1 %v1473_v24 }
 0x8c7   : > { %v2518_v25 = vpop.eup %2517 }
 0x8c8   : > { %v2520_v26 = vpop.eup %2519  ;;  %v1467_v31 = vmul.f32 %v2518_v25, %v2514_v12 }
 0x8c9   : > { %v2522_v27 = vpop.eup %2521  ;;  %v1464_v32 = vmul.f32 %v2520_v26, %v2512_v10 }
 0x8ca   : > { %v1466_v33 = vmul.f32 %v2522_v27, %v2510_v9 }
 0x8cb   : > { %v2524_v29 = vpop.eup %2523 }
 0x8cc   : > { %v1465_v28 = vmul.f32 %v2524_v29, %v2516_v14  ;;  %v1469_v35 = vpack.c.bf16 %v1467_v31, %v1466_v33 }
 0x8ce   : > { %v1468_v34 = vpack.c.bf16 %v1465_v28, %v1464_v32 }
 0x8d0   : > { %2339 = vmatprep.mubr.msk.bf16.mxu1 %vm950_vm2, %v1468_v34  ;;  %v2479_v34 = vld [vmem:[%s2870_s29] sm:$0xff]  }
 0x8d1   : > { %2340 = vmatmul.mubr.msk.bf16.vlgmr.msra.gmra.mrb[12].mxu1 %vm950_vm2, %v1469_v35  ;;  %2351 = vmatprep.subr.bf16.mxu1 %v2479_v34  ;;  %v2480_v35 = vld [vmem:[%s2870_s29 + $0x8] sm:$0xff]  }
 0x8d2   : > { %2352 = vmatpush3.bf16.msra.mxu1 %v2479_v34 }
 0x8d3   : > { %2353 = vmatprep.subr.bf16.mxu1 %v2480_v35 }
 0x8d6   : > { %2354 = vmatpush3.bf16.msra.mxu1 %v2480_v35 }
 0x9a4   : > { %v2341_v38 = vpop.f32.mrb[12].mxu1 }
 0x9a5   : > { %v1516_v39 = vpop.f32.mrb[13].mxu1 }
 0x9a6   : > { %v2342_v40 = vpop.f32.mrb[14].mxu1 }
 0x9a7   : > { %v2470_v41 = vpack.i.bf16 %v2342_v40, %v2341_v38  ;;  %v1519_v43 = vpop.f32.mrb[15].mxu1 }
 0x9a8   : > { %v2465_v44 = vpack.i.bf16 %v1519_v43, %v1516_v39 }
 0x9aa   : > { %2466 = vrot.lane.b32.xlu1 %v2465_v44, %s2645_s18 }
 0x9ae   : > { %2471 = vrot.lane.b32.xlu1 %v2470_v41, %s2645_s18 }
 0xa1c   : > { %v2467_v49 = vpop.permute.xlu1 %2466 }
 0xa1d   : > { %v2469_v50 = vunpack.i.h.bf16 %v2467_v49  ;;  %v2468_v51 = vunpack.i.l.bf16 %v2467_v49 }
 0xa1f   : > { %v1548_v52 = vsel %vm1155_vm3, %v2997_v48, %v2469_v50  ;;  %v1547_v53 = vsel %vm1155_vm3, %v2993_v46, %v2468_v51  ;;  %v2230_v46 = vld [vmem:[%s3249_s3] ss:$0 sm:$0xff] }
 0xa20   : > { %v1551_v54 = vpack.c.bf16 %v1548_v52, %v1547_v53  ;;  %v2472_v55 = vpop.permute.xlu1 %2471 }
 0xa21   : > { %v2474_v56 = vunpack.i.h.bf16 %v2472_v55  ;;  %v2473_v57 = vunpack.i.l.bf16 %v2472_v55 }
 0xa22   : > { %2347 = vmatprep.mubr.msk.bf16.mxu0 %vm950_vm2, %v1551_v54 }
 0xa23   : > { %v1550_v58 = vsel %vm1155_vm3, %v2995_v47, %v2474_v56  ;;  %v1549_v59 = vsel %vm1155_vm3, %v2991_v45, %v2473_v57  ;;  %v2236_v57 = vld [vmem:[%s3251_s24] ss:$0 sm:$0xff]  ;;  %s3256_s24 = sld [smem:[#allocation27_spill]] (!%p2251_p1) }
 0xa24   : > { %v1552_v60 = vpack.c.bf16 %v1550_v58, %v1549_v59 }
 0xa26   : > { %2348 = vmatmul.mubr.msk.bf16.vlgmr.msra.gmra.mrb[4].mxu0 %vm950_vm2, %v1552_v60 }
 0xaf9   : > { %v2349_v48 = vpop.f32.mrb[4].mxu0 }
 0xafa   : > { %v1625_v61 = vadd.f32 %v2349_v48, %v2230_v46  ;;  %v1616_v63 = vpop.f32.mrb[5].mxu0 }
 0xafb   : > { %v1617_v47 = vadd.f32 %v2230_v46, %v1616_v63  ;;  %v2350_v0 = vpop.f32.mrb[6].mxu0 }
 0xafc   : > { %v1619_v1 = vpop.f32.mrb[7].mxu0  ;;  %v1640_v45 = vmul.f32 %v2235_v62, %v1625_v61  ;;  %v1628_v3 = vadd.f32 %v2350_v0, %v2230_v46  ;;  %v2237_v61 = vld [vmem:[%s3252_s21] ss:$0 sm:$0xff] }
 0xafd   : > { %v1638_v2 = vmul.f32 %v2235_v62, %v1617_v47  ;;  %v1620_v4 = vadd.f32 %v2230_v46, %v1619_v1 }
 0xafe   : > { %v3043_v6 = vadd.f32 %v1640_v45, %v2920_v18  ;;  %v1641_v7 = vmul.f32 %v2235_v62, %v1628_v3 }
 0xaff   : > { %v3040_v5 = vadd.f32 %v1638_v2, %v2918_v17  ;;  %v1639_v42 = vmul.f32 %v2235_v62, %v1620_v4 }
 0xb00   : > { %v3053_v10 = vadd.f32 %v1641_v7, %v2928_v22  ;;  %v1654_v17 = vsel %vm950_vm2, %v3043_v6, 0.0  ;;  %v2482_v7 = vld [vmem:[%s2880_s23 + $0x8] sm:$0xff]  }
 0xb01   : > { %v3046_v8 = vadd.f32 %v1639_v42, %v2922_v19  ;;  %v1648_v9 = vsel %vm950_vm2, %v3040_v5, 0.0  ;;  %v2481_v42 = vld [vmem:[%s2880_s23] sm:$0xff]  }
 0xb02   : > { %1649 = vadd.xlane.f32.xlu0 %v1648_v9  ;;  %v1657_v18 = vsel %vm950_vm2, %v3053_v10, 0.0  ;;  %2359 = vmatprep.subr.bf16.mxu0 %v2481_v42  ;;  %v2483_v9 = vld [vmem:[%s2880_s23 + $0x10] sm:$0xff]  }
 0xb03   : > { %v1651_v30 = vsel %vm950_vm2, %v3046_v8, 0.0  ;;  %2360 = vmatpush3.bf16.msra.mxu0 %v2481_v42 }
 0xb04   : > { %1652 = vadd.xlane.f32.xlu1 %v1651_v30  ;;  %2361 = vmatprep.subr.bf16.mxu0 %v2482_v7  ;;  %v2484_v30 = vld [vmem:[%s2880_s23 + $0x18] sm:$0xff]  }
 0xb06   : > { %1655 = vadd.xlane.f32.xlu0 %v1654_v17  ;;  %v2238_v17 = vld [vmem:[%s3253_s7] ss:$0 sm:$0xff] }
 0xb07   : > { %2362 = vmatpush3.bf16.msra.mxu0 %v2482_v7 }
 0xb08   : > { %2363 = vmatprep.subr.bf16.mxu0 %v2483_v9 }
 0xb0a   : > { %1658 = vadd.xlane.f32.xlu0 %v1657_v18 }
 0xb0b   : > { %2364 = vmatpush3.bf16.msra.mxu0 %v2483_v9 }
 0xb0c   : > { %2365 = vmatprep.subr.bf16.mxu0 %v2484_v30 }
 0xb0f   : > { %2366 = vmatpush3.bf16.msra.mxu0 %v2484_v30 }
 0xb8f   : > { %v1650_v19 = vpop.xlane.xlu0 %1649 }
 0xb90   : > { %v1660_v11 = vmul.f32 0.03125, %v1650_v19 }
 0xb91   : > { %v1653_v12 = vpop.xlane.xlu1 %1652 }
 0xb92   : > { %v1664_v15 = vsub.f32 %v3040_v5, %v1660_v11  ;;  %v1661_v16 = vmul.f32 0.03125, %v1653_v12 }
 0xb93   : > { %v1656_v13 = vpop.xlane.xlu0 %1655 }
 0xb94   : > { %v1662_v14 = vmul.f32 0.03125, %v1656_v13  ;;  %v1665_v23 = vsub.f32 %v3046_v8, %v1661_v16  ;;  %v1668_v26 = vmul.f32 %v1664_v15, %v1664_v15 }
 0xb96   : > { %v1666_v20 = vsub.f32 %v3043_v6, %v1662_v14  ;;  %v1672_v29 = vsel %vm950_vm2, %v1668_v26, 0.0  ;;  %v1669_v31 = vmul.f32 %v1665_v23, %v1665_v23 }
 0xb97   : > { %v1659_v22 = vpop.xlane.xlu0 %1658 }
 0xb98   : > { %v1670_v21 = vmul.f32 %v1666_v20, %v1666_v20  ;;  %v1663_v24 = vmul.f32 0.03125, %v1659_v22  ;;  %v1675_v32 = vsel %vm950_vm2, %v1669_v31, 0.0 }
 0xb9a   : > { %v1678_v25 = vsel %vm950_vm2, %v1670_v21, 0.0  ;;  %v1667_v27 = vsub.f32 %v3053_v10, %v1663_v24 }
 0xb9b   : > { %1679 = vadd.xlane.f32.xlu0 %v1678_v25 }
 0xb9c   : > { %v1671_v28 = vmul.f32 %v1667_v27, %v1667_v27 }
 0xb9e   : > { %v1681_v33 = vsel %vm950_vm2, %v1671_v28, 0.0 }
 0xb9f   : > { %1673 = vadd.xlane.f32.xlu0 %v1672_v29 }
 0xba3   : > { %1676 = vadd.xlane.f32.xlu0 %v1675_v32 }
 0xba7   : > { %1682 = vadd.xlane.f32.xlu0 %v1681_v33 }
 0xc28   : > { %v1680_v36 = vpop.xlane.xlu0 %1679 }
 0xc29   : > { %v1686_v37 = vmul.f32 0.03125, %v1680_v36 }
 0xc2b   : > { %v1690_v40 = vadd.f32 1e-06, %v1686_v37 }
 0xc2c   : > { %v1674_v38 = vpop.xlane.xlu0 %1673 }
 0xc2d   : > { %v1684_v39 = vmul.f32 0.03125, %v1674_v38 }
 0xc2f   : > { %v1688_v41 = vadd.f32 1e-06, %v1684_v39 }
 0xc30   : > { %v1677_v43 = vpop.xlane.xlu0 %1676 }
 0xc31   : > { %2525 = vrsqrt.f32 %v1688_v41  ;;  %v1685_v44 = vmul.f32 0.03125, %v1677_v43 }
 0xc32   : > { %2527 = vrsqrt.f32 %v1690_v40 }
 0xc33   : > { %v1689_v49 = vadd.f32 1e-06, %v1685_v44 }
 0xc34   : > { %v1683_v50 = vpop.xlane.xlu0 %1682 }
 0xc35   : > { %2529 = vrsqrt.f32 %v1689_v49  ;;  %v1687_v51 = vmul.f32 0.03125, %v1683_v50 }
 0xc37   : > { %v1691_v52 = vadd.f32 1e-06, %v1687_v51 }
 0xc39   : > { %2531 = vrsqrt.f32 %v1691_v52 }
 0xc3b   : > { %v2526_v53 = vpop.eup %2525 }
 0xc3c   : > { %v1696_v54 = vmul.f32 %v2526_v53, %v1664_v15  ;;  %v2528_v55 = vpop.eup %2527 }
 0xc3d   : > { %v1698_v58 = vmul.f32 %v2528_v55, %v1666_v20 }
 0xc3e   : > { %v1706_v60 = vmul.f32 %v2236_v57, %v1696_v54 }
 0xc3f   : > { %v2530_v56 = vpop.eup %2529  ;;  %v1708_v62 = vmul.f32 %v2236_v57, %v1698_v58 }
 0xc40   : > { %v1697_v59 = vmul.f32 %v2530_v56, %v1665_v23  ;;  %v1716_v47 = vadd.f32 %v2237_v61, %v1706_v60 }
 0xc41   : > { %v1718_v2 = vadd.f32 %v2237_v61, %v1708_v62  ;;  %v2243_v62 = vld [vmem:[%s828_s4] ss:$0 sm:$0xff] }
 0xc42   : > { %v1707_v46 = vmul.f32 %v2236_v57, %v1697_v59 }
 0xc43   : > { %v2532_v48 = vpop.eup %2531 }
 0xc44   : > { %v1699_v63 = vmul.f32 %v2532_v48, %v1667_v27  ;;  %v1717_v0 = vadd.f32 %v2237_v61, %v1707_v46 }
 0xc46   : > { %v1709_v1 = vmul.f32 %v2236_v57, %v1699_v63  ;;  %v1720_v45 = vpack.c.bf16 %v1717_v0, %v1716_v47  ;;  %v2250_v47 = vld [vmem:[%s831_s2] ss:$0 sm:$0xff] }
 0xc48   : > { %2355 = vmatprep.mubr.msk.bf16.mxu1 %vm950_vm2, %v1720_v45  ;;  %v1719_v3 = vadd.f32 %v2237_v61, %v1709_v1 }
 0xc4a   : > { %v1721_v4 = vpack.c.bf16 %v1719_v3, %v1718_v2 }
 0xc4c   : > { %2356 = vmatmul.mubr.msk.bf16.vlgmr.msra.gmra.mrb[16].mxu1 %vm950_vm2, %v1721_v4 }
 0xd1f   : > { %v2357_v18 = vpop.f32.mrb[16].mxu1 }
 0xd20   : > { %v1794_v19 = vadd.f32 %v2357_v18, %v2238_v17  ;;  %v1785_v11 = vpop.f32.mrb[17].mxu1 }
 0xd21   : > { %v1786_v12 = vadd.f32 %v2238_v17, %v1785_v11  ;;  %v2358_v13 = vpop.f32.mrb[18].mxu1 }
 0xd22   : > { %v1802_v14 = vmul.f32 %v1794_v19, %v1794_v19  ;;  %v1797_v15 = vadd.f32 %v2358_v13, %v2238_v17  ;;  %v1788_v16 = vpop.f32.mrb[19].mxu1 }
 0xd23   : > { %v1800_v20 = vmul.f32 %v1786_v12, %v1786_v12  ;;  %v1789_v22 = vadd.f32 %v2238_v17, %v1788_v16 }
 0xd24   : > { %v1806_v21 = vmul.f32 %v1802_v14, %v1794_v19  ;;  %v1803_v23 = vmul.f32 %v1797_v15, %v1797_v15 }
 0xd25   : > { %v1804_v24 = vmul.f32 %v1800_v20, %v1786_v12  ;;  %v1801_v25 = vmul.f32 %v1789_v22, %v1789_v22 }
 0xd26   : > { %v1810_v26 = vmul.f32 0.044715, %v1806_v21  ;;  %v1807_v27 = vmul.f32 %v1803_v23, %v1797_v15  ;;  %v1956_v21 = vld [vmem:[%s3255_s1] sm:$0x1] (!%p2251_p1) }
 0xd27   : > { %v1808_v29 = vmul.f32 0.044715, %v1804_v24  ;;  %v1805_v31 = vmul.f32 %v1801_v25, %v1789_v22  ;;  %v1957_v24 = vld [vmem:[%s3256_s24] sm:$0x1] (!%p2251_p1) }
 0xd28   : > { %v1814_v32 = vadd.f32 %v1810_v26, %v1794_v19  ;;  %v1811_v28 = vmul.f32 0.044715, %v1807_v27 }
 0xd29   : > { %v1812_v33 = vadd.f32 %v1808_v29, %v1786_v12  ;;  %v1809_v34 = vmul.f32 0.044715, %v1805_v31 }
 0xd2a   : > { %v1818_v35 = vmul.f32 0.7978846, %v1814_v32  ;;  %v1815_v36 = vadd.f32 %v1811_v28, %v1797_v15 }
 0xd2b   : > { %v1816_v37 = vmul.f32 0.7978846, %v1812_v33  ;;  %v1813_v38 = vadd.f32 %v1809_v34, %v1789_v22 }
 0xd2c   : > { %2533 = vtanh.f32 %v1818_v35  ;;  %v1819_v39 = vmul.f32 0.7978846, %v1815_v36 }
 0xd2d   : > { %2535 = vtanh.f32 %v1816_v37  ;;  %v1817_v40 = vmul.f32 0.7978846, %v1813_v38 }
 0xd2e   : > { %2537 = vtanh.f32 %v1819_v39 }
 0xd2f   : > { %2539 = vtanh.f32 %v1817_v40 }
 0xd36   : > { %v2534_v41 = vpop.eup %2533 }
 0xd37   : > { %v2536_v43 = vpop.eup %2535  ;;  %v1826_v44 = vadd.f32 1.0, %v2534_v41 }
 0xd38   : > { %v2538_v49 = vpop.eup %2537  ;;  %v1824_v50 = vadd.f32 1.0, %v2536_v43 }
 0xd39   : > { %v2540_v51 = vpop.eup %2539  ;;  %v1830_v52 = vmul.f32 0.5, %v1826_v44  ;;  %v1827_v53 = vadd.f32 1.0, %v2538_v49 }
 0xd3a   : > { %v1828_v54 = vmul.f32 0.5, %v1824_v50  ;;  %v1825_v55 = vadd.f32 1.0, %v2540_v51 }
 0xd3b   : > { %v1831_v56 = vmul.f32 0.5, %v1827_v53  ;;  %v1834_v58 = vmul.f32 %v1830_v52, %v1794_v19 }
 0xd3c   : > { %v1829_v57 = vmul.f32 0.5, %v1825_v55  ;;  %v1832_v60 = vmul.f32 %v1828_v54, %v1786_v12 }
 0xd3d   : > { %v1835_v59 = vmul.f32 %v1831_v56, %v1797_v15 }
 0xd3e   : > { %v1833_v46 = vmul.f32 %v1829_v57, %v1789_v22 }
 0xd3f   : > { %v1837_v48 = vpack.c.bf16 %v1835_v59, %v1834_v58 }
 0xd40   : > { %v1836_v61 = vpack.c.bf16 %v1833_v46, %v1832_v60 }
 0xd42   : > { %2367 = vmatprep.mubr.msk.bf16.mxu0 %vm1877_vm5, %v1836_v61 }
 0xd43   : > { %2368 = vmatmul.mubr.msk.bf16.vlgmr.msra.gmra.mrb[8].mxu0 %vm1877_vm5, %v1837_v48 }
 0xe16   : > { %v2369_v63 = vpop.f32.mrb[8].mxu0 }
 0xe17   : > { %v1927_v0 = vadd.f32 %v2369_v63, %v2243_v62  ;;  %v1918_v1 = vpop.f32.mrb[9].mxu0 }
 0xe18   : > { %v1919_v45 = vadd.f32 %v2243_v62, %v1918_v1  ;;  %v2370_v2 = vpop.f32.mrb[10].mxu0 }
 0xe19   : > { %v1942_v3 = vmul.f32 %v2250_v47, %v1927_v0  ;;  %v1930_v4 = vadd.f32 %v2370_v2, %v2243_v62  ;;  %v1921_v42 = vpop.f32.mrb[11].mxu0 }
 0xe1a   : > { %v1940_v7 = vmul.f32 %v2250_v47, %v1919_v45  ;;  %v1922_v9 = vadd.f32 %v2243_v62, %v1921_v42  ;;  %1955 = sbr.rel (%p2251_p1) target bundleno = 3928 (0xf58), region = 104 }
 0xe1b   : > { %v1946_v30 = vadd.f32 %v1942_v3, %v3043_v6  ;;  %v1943_v17 = vmul.f32 %v2250_v47, %v1930_v4 }
 0xe1c   : > { %v1944_v18 = vadd.f32 %v1940_v7, %v3040_v5  ;;  %v1941_v19 = vmul.f32 %v2250_v47, %v1922_v9 }
 0xe1d   : > { %1950 = vst.msk [vmem:[#allocation2 + $0x10] sm:$0xff] %vm950_vm2, %v1946_v30  ;;  %v1947_v11 = vadd.f32 %v1943_v17, %v3053_v10 }
 0xe1e   : > { %1948 = vst.msk [vmem:[#allocation2] sm:$0xff] %vm950_vm2, %v1944_v18  ;;  %v1945_v12 = vadd.f32 %v1941_v19, %v3046_v8  ;;  %v1959_v6 = vsel (!%p2251_p1), %vm1958_vm6, %v1944_v18, 0.0 }
 0xe1f   : > { %1951 = vst.msk [vmem:[#allocation2 + $0x18] sm:$0xff] %vm950_vm2, %v1947_v11  ;;  %1960 = vadd.xlane.f32.xlu0 (!%p2251_p1), %v1959_v6 }
 0xe20   : > { %1949 = vst.msk [vmem:[#allocation2 + $0x8] sm:$0xff] %vm950_vm2, %v1945_v12 }
 0xeac   : > { %v1961_v5 = vpop.xlane.xlu0 %1960 }
 0xead   : > { %v1962_v13 = vmul.f32 0.03125, %v1961_v5 }
 0xeaf   : > { %v1963_v14 = vsub.f32 %v1944_v18, %v1962_v13 }
 0xeb1   : > { %v1964_v10 = vmul.f32 %v1963_v14, %v1963_v14 }
 0xeb3   : > { %v1965_v15 = vsel %vm1958_vm6, %v1964_v10, 0.0 }
 0xeb4   : > { %1966 = vadd.xlane.f32.xlu0 %v1965_v15 }
 0xf41   : > { %v1967_v8 = vpop.xlane.xlu0 %1966 }
 0xf42   : > { %v1968_v16 = vmul.f32 0.03125, %v1967_v8 }
 0xf44   : > { %v1969_v20 = vadd.f32 1e-06, %v1968_v16 }
 0xf46   : > { %2541 = vrsqrt.f32 %v1969_v20 }
 0xf50   : > { %v2542_v22 = vpop.eup %2541 }
 0xf51   : > { %v1971_v23 = vmul.f32 %v2542_v22, %v1963_v14 }
 0xf53   : > { %v1972_v25 = vmul.f32 %v1971_v23, %v1956_v21 }
 0xf55   : > { %v1973_v26 = vadd.f32 %v1972_v25, %v1957_v24 }
 0xf57   : > { %1974 = vst.msk [vmem:[%s2892_s25] sm:$0x1] %vm1958_vm6, %v1973_v26 }
 0xf58 PF: > { %s3257_s17 = sld [smem:[#allocation9_spill]]  ;;  %s3259_s7 = sld [smem:[#allocation28_spill]] }
 0xf59   : > { %s1988_s3 = sshll.u32 %s2892_s25, 4  ;;  %s3260_s19 = sand.u32 1, %s2613_s30   ;;  %s1989_s3 = int_to_ptr.vmem [resolvable:$true] %s1988_s3 }
 0xf5a   : > { %s1976_s27 = scalar_lea.sflag [#allocation4], %s3260_s19  ;;  %s2543_s0 = scalar_lea.vmem %s1989_s3, 16 }
 0xf5b   : > { %p2544_p2 = scmp.ne.s32.totalorder %s1989_s3, %s2543_s0  ;;  %s2646_s4 = smov [#allocation3]  }
 0xf5c   : > { %s2547_s2 = sshll.u32 %s2646_s4, 4  ;;  %s2548_s2 = int_to_ptr.vmem [resolvable:$false] %s2547_s2 }
 0xf5d   : > { %p2545_p4 = pnand %p2544_p2, %p2796_p3  ;;  %s2549_s1 = scalar_lea.vmem %s2548_s2, 32 }
 0xf5e   : > { %s2252_s21 = sshll.u32 %s3257_s17, 4  ;;  %p2550_p6 = scmp.lt.s32.totalorder %s1989_s3, %s2548_s2 }
 0xf5f   : > { %s3123_s23 = scalar_lea.hbm %s3259_s7, %s2252_s21  ;;  %p2546_p5 = pneg %p2545_p4 }
 0xf60   : > { %p2551_p7 = scmp.lt.s32.totalorder %s2549_s1, %s2543_s0 }
 0xf62   : > { %p2552_p8 = por %p2551_p7, %p2550_p6 }
 0xf64   : > { %p2553_p10 = pnand %p2552_p8, %p2546_p5 }
 0xf66   : > { %2556 = shalt.err (!%p2553_p10)
}
 0xf67   : > { %s2557_s25 = scalar_lea.hbm %s3123_s23, 16  ;;  %s2561_s24 = scalar_lea.hbm %s3259_s7, 32 }
 0xf68   : > { %p2558_p11 = scmp.ne.s32.totalorder %s3123_s23, %s2557_s25  ;;  %p2562_p0 = scmp.lt.u32.totalorder %s3123_s23, %s3259_s7 }
 0xf69   : > { %p2563_p1 = scmp.lt.u32.totalorder %s2561_s24, %s2557_s25  ;;  %p2565_p4 = scmp.lt.u32.totalorder %s2557_s25, %s3123_s23 }
 0xf6a   : > { %p2559_p12 = pnand %p2558_p11, %p2796_p3 }
 0xf6b   : > { %p2564_p2 = por %p2563_p1, %p2562_p0 }
 0xf6c   : > { %p2560_p13 = pneg %p2559_p12 }
 0xf6d   : > { %p2566_p5 = por %p2565_p4, %p2564_p2 }
 0xf6f   : > { %p2567_p6 = pnand %p2566_p5, %p2560_p13 }
 0xf71   : > { %2570 = shalt.err (!%p2567_p6)
}
 0xf72   : > { %2371 = dma.vmem_to_hbm [thread:$0]  (%p2796_p3), %s1989_s3, 16, %s3123_s23, %s1976_s27  }
 0xf73 PF: > { %s3261_s18 = sld [smem:[#allocation12_spill]]  ;;  %s3262_s20 = sld [smem:[#allocation6_spill]] }
 0xf79   : > { %p2377_p7 = scmp.ge.s32.totalorder %s3261_s18, 2  ;;  %s2000_s0 = sand.u32 1, %s3262_s20  }
 0xf7a   : > { %s2001_s4 = scalar_lea.sflag [#allocation4], %s2000_s0 }
 0xf7b   : > { %p2374_p8 = pnand %p2377_p7, %p2806_p9 }
 0xf7d   : > { %2604 = dma.done.wait (!%p2374_p8), %s2001_s4, 16  }
 0xf7e   : > { %2606 = vsyncadd (!%p2374_p8), %s2001_s4, 4294967280  ;;  %s32_s23 = sadd.s32 1, %s3261_s18   ;;  %s3264_s2 = sld [smem:[#allocation7_spill]] }
 0xf7f   : > { %p29_p10 = scmp.ge.s32.totalorder %s32_s23, 6   ;;  %s3265_s20 = sld [smem:[#allocation17_spill]] }
 0xf80   : > { %s3266_s21 = sld [smem:[#allocation10_spill]]  ;;  %s3267_s1 = sld [smem:[#allocation11_spill]] }
 0xf81   : > { %s3268_s22 = sld [smem:[#allocation13_spill]]  ;;  %s3269_s5 = sld [smem:[#allocation15_spill]] }
 0xf82   : > { %s3270_s0 = smov %s2613_s30  ;;  %31 = sbr.rel (!%p29_p10) target bundleno = 16 (0x10), region = 181 }
 0xf84   : > { %s3271_s30 = smov %s3264_s2 }
 0xf87   : > { %s3272_s2 = smov %s3269_s5 }
 0xf89   :  { %2005 = vsyncpa [#allocation4], 1 }
 0xf8a   :  { %2007 = vsyncpa [#allocation4 + $0x1], 1 }

</bundles_post_ra>
